<compile_context>
chip_gen: v6e
topology: v6e:2x2x1
jax: 0.10.0
libtpu: 0.0.40
codegen_flags: <defaults>
</compile_context>

<pallas_src>
import functools

import numpy as np
import jax
import jax.numpy as jnp
from jax.experimental import pallas as pl
from jax.experimental.pallas import tpu as pltpu

# constants of the torch module
N_ANGLES = 300
R1, R2 = 0.05, 0.4
BLUR_KSIZE = 5
BLUR_SIGMA = 1.5


# ----------------------------------------------------------------------------
# Pallas kernel 1: depthwise 5x5 Gaussian blur on a reflect-padded image
# ----------------------------------------------------------------------------
def _blur_kernel(xp_ref, o_ref, *, H, W, k2d):
    x = xp_ref[0]                                        # (H+4, W+4)
    acc = jnp.zeros((H, W), jnp.float32)
    for dy in range(BLUR_KSIZE):
        for dx in range(BLUR_KSIZE):
            acc = acc + float(k2d[dy, dx]) * x[dy:dy + H, dx:dx + W]
    o_ref[0] = acc.astype(o_ref.dtype)


def gaussian_blur_5x5(x):
    """x: (b, nc, H, W) f32 -> blurred (b, nc, H, W).
    Matches torchvision GaussianBlur((5,5),(1.5,1.5)): reflect pad + depthwise conv."""
    b, nc, H, W = x.shape
    half = (BLUR_KSIZE - 1) * 0.5
    t = np.linspace(-half, half, BLUR_KSIZE)
    k1 = np.exp(-0.5 * (t / BLUR_SIGMA) ** 2)
    k1 = k1 / k1.sum()
    k2d = np.outer(k1, k1)                               # symmetric 5x5 kernel

    pad = BLUR_KSIZE // 2
    xp = jnp.pad(x.reshape(b * nc, H, W),
                 ((0, 0), (pad, pad), (pad, pad)), mode="reflect")
    Hp, Wp = H + 2 * pad, W + 2 * pad

    out = pl.pallas_call(
        functools.partial(_blur_kernel, H=H, W=W, k2d=k2d),
        out_shape=jax.ShapeDtypeStruct((b * nc, H, W), jnp.float32),
        grid_spec=pltpu.PrefetchScalarGridSpec(
            num_scalar_prefetch=0,
            grid=(b * nc,),
            in_specs=[pl.BlockSpec((1, Hp, Wp), lambda i: (i, 0, 0))],
            out_specs=pl.BlockSpec((1, H, W), lambda i: (i, 0, 0)),
        ),
        compiler_params=pltpu.CompilerParams(
            dimension_semantics=("parallel",),
        ),
    )(xp)
    return out.reshape(b, nc, H, W)


# ----------------------------------------------------------------------------
# Pallas kernel 2: bilinear grid_sample (zeros padding, align_corners=False)
# realised as a one-hot (P_in, P_out) weight matrix + one MXU matmul per batch.
# ----------------------------------------------------------------------------
def _grid_sample_kernel(img_ref, ix_ref, iy_ref, o_ref, *, ny, nx):
    P = ny * nx
    ix = ix_ref[0]                                       # (1, P) pixel x coord
    iy = iy_ref[0]                                       # (1, P) pixel y coord

    x0f = jnp.floor(ix)
    y0f = jnp.floor(iy)
    wx1 = ix - x0f
    wy1 = iy - y0f
    wx0 = 1.0 - wx1
    wy0 = 1.0 - wy1
    x0 = x0f.astype(jnp.int32)
    y0 = y0f.astype(jnp.int32)
    x1 = x0 + 1
    y1 = y0 + 1

    # input-pixel index along the sublane (row) dimension
    row = jax.lax.broadcasted_iota(jnp.int32, (P, P), 0)

    def corner(yc, xc, w):
        valid = (xc >= 0) & (xc < nx) & (yc >= 0) & (yc < ny)
        wv = jnp.where(valid, w, 0.0)                    # zeros padding mode
        idx = yc * nx + xc                               # (1, P) flat input index
        return jnp.where(row == idx, wv, 0.0)            # (P, P)

    g = (corner(y0, x0, wy0 * wx0) + corner(y0, x1, wy0 * wx1)
         + corner(y1, x0, wy1 * wx0) + corner(y1, x1, wy1 * wx1))

    # out[ch, out_pix] = sum_in_pix img[ch, in_pix] * g[in_pix, out_pix]
    o_ref[0] = jnp.dot(img_ref[0], g,
                       preferred_element_type=jnp.float32).astype(o_ref.dtype)


def grid_sample_rotate(img, ix, iy):
    """img: (b, nc, ny, nx) f32; ix/iy: (b, 1, ny*nx) pixel-space sample coords."""
    b, nc, ny, nx = img.shape
    P = ny * nx
    img_flat = img.reshape(b, nc, P)
    out = pl.pallas_call(
        functools.partial(_grid_sample_kernel, ny=ny, nx=nx),
        out_shape=jax.ShapeDtypeStruct((b, nc, P), jnp.float32),
        grid_spec=pltpu.PrefetchScalarGridSpec(
            num_scalar_prefetch=0,
            grid=(b,),
            in_specs=[
                pl.BlockSpec((1, nc, P), lambda i: (i, 0, 0)),
                pl.BlockSpec((1, 1, P), lambda i: (i, 0, 0)),
                pl.BlockSpec((1, 1, P), lambda i: (i, 0, 0)),
            ],
            out_specs=pl.BlockSpec((1, nc, P), lambda i: (i, 0, 0)),
        ),
        compiler_params=pltpu.CompilerParams(
            dimension_semantics=("parallel",),
        ),
    )(img_flat, ix, iy)
    return out.reshape(b, nc, ny, nx)


# ----------------------------------------------------------------------------
# Static helpers (compile-time constants / tiny XLA glue)
# ----------------------------------------------------------------------------
def make_grad_weight_mat(ny, nx, n=N_ANGLES, r1=R1, r2=R2):
    """Constant (P, 2) matrix M so that avg_grad[b] = (sum_c blurred[b,c]).flat @ M,
    reproducing FastbatchcolorimageInterpNet(grad_required=True) at the fixed ring
    points followed by sum over (channels, points)."""
    rad = 2.0 * np.pi * np.arange(n, dtype=np.float64) / n
    c, s = np.cos(rad), np.sin(rad)
    pts = [np.stack([r * c - r * s, r * s + r * c], axis=1) for r in (r1, r2)]
    coords = np.concatenate(pts, axis=0) + 0.5           # (2n, 2)

    x0y = coords[:, 0] * (ny - 1)                        # row coordinate
    x0x = coords[:, 1] * (nx - 1)                        # col coordinate
    locs = (x0y < 0.0) | (x0y > ny - 1) | (x0x < 0.0) | (x0x > nx - 1)
    x0y = np.where(locs, 0.0, x0y)
    x0x = np.where(locs, 0.0, x0x)
    yg = np.floor(x0y).astype(np.int64)
    xg = np.floor(x0x).astype(np.int64)

    # points whose +1 neighbor would fall off the image never occur for the default
    # config; exclude them (the torch code would index-error there anyway).
    valid = (~locs) & (yg + 1 <= ny - 1) & (xg + 1 <= nx - 1)
    m = valid.astype(np.float64)
    t0 = (xg - x0x) * m                                  # x_grid - x0[:,1]
    t1 = (yg - x0y) * m                                  # y_grid - x0[:,0]
    yg0 = np.clip(yg, 0, ny - 1)
    yg1 = np.clip(yg + 1, 0, ny - 1)
    xg0 = np.clip(xg, 0, nx - 1)
    xg1 = np.clip(xg + 1, 0, nx - 1)

    W = np.zeros((2, ny, nx), dtype=np.float64)
    # component 0: (a1 - a2) * t0 + a1
    np.add.at(W[0], (yg1, xg0), t0 + m)
    np.add.at(W[0], (yg0, xg0), -t0 - m)
    np.add.at(W[0], (yg1, xg1), -t0)
    np.add.at(W[0], (yg0, xg1), t0)
    # component 1: (a1 - a2) * t1 + a3
    np.add.at(W[1], (yg1, xg0), t1)
    np.add.at(W[1], (yg0, xg0), -t1 - m)
    np.add.at(W[1], (yg1, xg1), -t1)
    np.add.at(W[1], (yg0, xg1), t1 + m)
    return W.reshape(2, ny * nx).T.astype(np.float32)    # (P, 2)


def make_pixel_coords(cose, sine, ny, nx):
    """affine_grid(align_corners=False) with theta=[[c,-s,0],[s,c,0]] followed by the
    grid_sample unnormalization -> pixel-space (ix, iy), each (b, 1, ny*nx)."""
    ys = (2.0 * jnp.arange(ny, dtype=jnp.float32) + 1.0) / ny - 1.0
    xs = (2.0 * jnp.arange(nx, dtype=jnp.float32) + 1.0) / nx - 1.0
    xb = jnp.tile(xs[None, :], (ny, 1))                  # x varies along width
    yb = jnp.tile(ys[:, None], (1, nx))                  # y varies along height
    gx = cose[:, None, None] * xb[None] - sine[:, None, None] * yb[None]
    gy = sine[:, None, None] * xb[None] + cose[:, None, None] * yb[None]
    ix = ((gx + 1.0) * nx - 1.0) * 0.5
    iy = ((gy + 1.0) * ny - 1.0) * 0.5
    b = cose.shape[0]
    return ix.reshape(b, 1, ny * nx), iy.reshape(b, 1, ny * nx)


# ----------------------------------------------------------------------------
# Full forward (StableGradRot.forward with mask=False)
# ----------------------------------------------------------------------------
def stable_grad_rot_forward(image_batch):
    b, nc, ny, nx = image_batch.shape
    x = image_batch.astype(jnp.float32)

    # 1) Gaussian blur (Pallas)
    blurred = gaussian_blur_5x5(x)

    # 2) average image gradient at the fixed ring points -> (b, 2), normalized.
    wmat = jnp.asarray(make_grad_weight_mat(ny, nx))     # (P, 2) constant
    bsum = blurred.sum(axis=1).reshape(b, ny * nx)       # channel sum (linearity)
    g = bsum @ wmat                                      # tiny (b,2); plain XLA
    g = g / jnp.sqrt(jnp.sum(g * g, axis=1, keepdims=True))
    sine, cose = g[:, 0], g[:, 1]

    # 3) rotate the ORIGINAL images by the per-batch matrix (Pallas grid_sample)
    ix, iy = make_pixel_coords(cose, sine, ny, nx)
    rotated = grid_sample_rotate(x, ix, iy)
    return rotated


# ----------------------------------------------------------------------------
# Pure-JAX reference for the grid-sample kernel (correctness cross-check only)
# ----------------------------------------------------------------------------
def _grid_sample_ref(img, ix, iy):
    b, nc, ny, nx = img.shape
    P = ny * nx
    ixf = ix.reshape(b, P)
    iyf = iy.reshape(b, P)
    x0 = jnp.floor(ixf).astype(jnp.int32)
    y0 = jnp.floor(iyf).astype(jnp.int32)
    wx1 = ixf - x0
    wy1 = iyf - y0
    imgf = img.reshape(b, nc, P)

    def corner(yc, xc, w):
        valid = (xc >= 0) & (xc < nx) & (yc >= 0) & (yc < ny)
        idx = jnp.clip(yc, 0, ny - 1) * nx + jnp.clip(xc, 0, nx - 1)
        vals = jnp.take_along_axis(imgf, jnp.broadcast_to(idx[:, None, :], imgf.shape), axis=2)
        return vals * jnp.where(valid, w, 0.0)[:, None, :]

    out = (corner(y0, x0, (1 - wy1) * (1 - wx1)) + corner(y0, x0 + 1, (1 - wy1) * wx1)
           + corner(y0 + 1, x0, wy1 * (1 - wx1)) + corner(y0 + 1, x0 + 1, wy1 * wx1))
    return out.reshape(b, nc, ny, nx)


if __name__ == "__main__":
    key = jax.random.PRNGKey(0)
    kx, ka = jax.random.split(key)
    # small "color image" batch: (batch=2, channels=3, 16x16)
    x = jax.random.uniform(kx, (2, 3, 16, 16), dtype=jnp.float32)

    fwd = jax.jit(stable_grad_rot_forward)
    out = jax.block_until_ready(fwd(x))
    assert out.shape == x.shape, out.shape
    assert bool(jnp.all(jnp.isfinite(out)))

    # unit-check the Pallas grid-sample kernel against a pure-JAX gather reference
    ang = jax.random.uniform(ka, (2,), minval=0.0, maxval=2.0 * np.pi)
    cose_t, sine_t = jnp.cos(ang), jnp.sin(ang)
    ix_t, iy_t = make_pixel_coords(cose_t, sine_t, 16, 16)
    got = jax.block_until_ready(grid_sample_rotate(x, ix_t, iy_t))
    ref = _grid_sample_ref(x, ix_t, iy_t)
    assert np.allclose(np.asarray(got), np.asarray(ref), atol=1e-4, rtol=1e-4)

    print("KERNEL_OK")
</pallas_src>

<mosaic_0001>
module attributes {stable_mosaic.version = 11 : i64} {
  func.func @_blur_kernel(%arg0: i32, %arg1: memref<1x20x20xf32, #tpu.memory_space<vmem>>, %arg2: memref<1x16x16xf32, #tpu.memory_space<vmem>>) attributes {dimension_semantics = [#tpu.dimension_semantics<parallel>], iteration_bounds = array<i64: 6>, scalar_prefetch = 0 : i64, scratch_operands = 0 : i64, tpu.core_type = #tpu.core_type<tc>, window_params = [{transform_indices = @transform_0, window_bounds = array<i64: 1, 20, 20>}, {transform_indices = @transform_1, window_bounds = array<i64: 1, 16, 16>}]} {
    %c0 = arith.constant 0 : index
    %c0_0 = arith.constant 0 : index
    %c0_1 = arith.constant 0 : index
    %0 = vector.load %arg1[%c0, %c0_0, %c0_1] : memref<1x20x20xf32, #tpu.memory_space<vmem>>, vector<1x20x20xf32>
    %1 = vector.shape_cast %0 : vector<1x20x20xf32> to vector<20x20xf32>
    %cst = arith.constant 0.000000e+00 : f32
    %2 = vector.broadcast %cst : f32 to vector<16x16xf32>
    %3 = vector.extract_strided_slice %1 {offsets = [0, 0], sizes = [16, 16], strides = [1, 1]} : vector<20x20xf32> to vector<16x16xf32>
    %cst_2 = arith.constant 0.0144188181 : f32
    %4 = vector.broadcast %cst_2 : f32 to vector<16x16xf32>
    %5 = arith.mulf %4, %3 : vector<16x16xf32>
    %6 = arith.addf %2, %5 : vector<16x16xf32>
    %7 = vector.extract_strided_slice %1 {offsets = [0, 1], sizes = [16, 16], strides = [1, 1]} : vector<20x20xf32> to vector<16x16xf32>
    %cst_3 = arith.constant 0.0280840229 : f32
    %8 = vector.broadcast %cst_3 : f32 to vector<16x16xf32>
    %9 = arith.mulf %8, %7 : vector<16x16xf32>
    %10 = arith.addf %6, %9 : vector<16x16xf32>
    %11 = vector.extract_strided_slice %1 {offsets = [0, 2], sizes = [16, 16], strides = [1, 1]} : vector<20x20xf32> to vector<16x16xf32>
    %cst_4 = arith.constant 3.507270e-02 : f32
    %12 = vector.broadcast %cst_4 : f32 to vector<16x16xf32>
    %13 = arith.mulf %12, %11 : vector<16x16xf32>
    %14 = arith.addf %10, %13 : vector<16x16xf32>
    %15 = vector.extract_strided_slice %1 {offsets = [0, 3], sizes = [16, 16], strides = [1, 1]} : vector<20x20xf32> to vector<16x16xf32>
    %cst_5 = arith.constant 0.0280840229 : f32
    %16 = vector.broadcast %cst_5 : f32 to vector<16x16xf32>
    %17 = arith.mulf %16, %15 : vector<16x16xf32>
    %18 = arith.addf %14, %17 : vector<16x16xf32>
    %19 = vector.extract_strided_slice %1 {offsets = [0, 4], sizes = [16, 16], strides = [1, 1]} : vector<20x20xf32> to vector<16x16xf32>
    %cst_6 = arith.constant 0.0144188181 : f32
    %20 = vector.broadcast %cst_6 : f32 to vector<16x16xf32>
    %21 = arith.mulf %20, %19 : vector<16x16xf32>
    %22 = arith.addf %18, %21 : vector<16x16xf32>
    %23 = vector.extract_strided_slice %1 {offsets = [1, 0], sizes = [16, 16], strides = [1, 1]} : vector<20x20xf32> to vector<16x16xf32>
    %cst_7 = arith.constant 0.0280840229 : f32
    %24 = vector.broadcast %cst_7 : f32 to vector<16x16xf32>
    %25 = arith.mulf %24, %23 : vector<16x16xf32>
    %26 = arith.addf %22, %25 : vector<16x16xf32>
    %27 = vector.extract_strided_slice %1 {offsets = [1, 1], sizes = [16, 16], strides = [1, 1]} : vector<20x20xf32> to vector<16x16xf32>
    %cst_8 = arith.constant 0.054700207 : f32
    %28 = vector.broadcast %cst_8 : f32 to vector<16x16xf32>
    %29 = arith.mulf %28, %27 : vector<16x16xf32>
    %30 = arith.addf %26, %29 : vector<16x16xf32>
    %31 = vector.extract_strided_slice %1 {offsets = [1, 2], sizes = [16, 16], strides = [1, 1]} : vector<20x20xf32> to vector<16x16xf32>
    %cst_9 = arith.constant 0.0683122948 : f32
    %32 = vector.broadcast %cst_9 : f32 to vector<16x16xf32>
    %33 = arith.mulf %32, %31 : vector<16x16xf32>
    %34 = arith.addf %30, %33 : vector<16x16xf32>
    %35 = vector.extract_strided_slice %1 {offsets = [1, 3], sizes = [16, 16], strides = [1, 1]} : vector<20x20xf32> to vector<16x16xf32>
    %cst_10 = arith.constant 0.054700207 : f32
    %36 = vector.broadcast %cst_10 : f32 to vector<16x16xf32>
    %37 = arith.mulf %36, %35 : vector<16x16xf32>
    %38 = arith.addf %34, %37 : vector<16x16xf32>
    %39 = vector.extract_strided_slice %1 {offsets = [1, 4], sizes = [16, 16], strides = [1, 1]} : vector<20x20xf32> to vector<16x16xf32>
    %cst_11 = arith.constant 0.0280840229 : f32
    %40 = vector.broadcast %cst_11 : f32 to vector<16x16xf32>
    %41 = arith.mulf %40, %39 : vector<16x16xf32>
    %42 = arith.addf %38, %41 : vector<16x16xf32>
    %43 = vector.extract_strided_slice %1 {offsets = [2, 0], sizes = [16, 16], strides = [1, 1]} : vector<20x20xf32> to vector<16x16xf32>
    %cst_12 = arith.constant 3.507270e-02 : f32
    %44 = vector.broadcast %cst_12 : f32 to vector<16x16xf32>
    %45 = arith.mulf %44, %43 : vector<16x16xf32>
    %46 = arith.addf %42, %45 : vector<16x16xf32>
    %47 = vector.extract_strided_slice %1 {offsets = [2, 1], sizes = [16, 16], strides = [1, 1]} : vector<20x20xf32> to vector<16x16xf32>
    %cst_13 = arith.constant 0.0683122948 : f32
    %48 = vector.broadcast %cst_13 : f32 to vector<16x16xf32>
    %49 = arith.mulf %48, %47 : vector<16x16xf32>
    %50 = arith.addf %46, %49 : vector<16x16xf32>
    %51 = vector.extract_strided_slice %1 {offsets = [2, 2], sizes = [16, 16], strides = [1, 1]} : vector<20x20xf32> to vector<16x16xf32>
    %cst_14 = arith.constant 0.0853117331 : f32
    %52 = vector.broadcast %cst_14 : f32 to vector<16x16xf32>
    %53 = arith.mulf %52, %51 : vector<16x16xf32>
    %54 = arith.addf %50, %53 : vector<16x16xf32>
    %55 = vector.extract_strided_slice %1 {offsets = [2, 3], sizes = [16, 16], strides = [1, 1]} : vector<20x20xf32> to vector<16x16xf32>
    %cst_15 = arith.constant 0.0683122948 : f32
    %56 = vector.broadcast %cst_15 : f32 to vector<16x16xf32>
    %57 = arith.mulf %56, %55 : vector<16x16xf32>
    %58 = arith.addf %54, %57 : vector<16x16xf32>
    %59 = vector.extract_strided_slice %1 {offsets = [2, 4], sizes = [16, 16], strides = [1, 1]} : vector<20x20xf32> to vector<16x16xf32>
    %cst_16 = arith.constant 3.507270e-02 : f32
    %60 = vector.broadcast %cst_16 : f32 to vector<16x16xf32>
    %61 = arith.mulf %60, %59 : vector<16x16xf32>
    %62 = arith.addf %58, %61 : vector<16x16xf32>
    %63 = vector.extract_strided_slice %1 {offsets = [3, 0], sizes = [16, 16], strides = [1, 1]} : vector<20x20xf32> to vector<16x16xf32>
    %cst_17 = arith.constant 0.0280840229 : f32
    %64 = vector.broadcast %cst_17 : f32 to vector<16x16xf32>
    %65 = arith.mulf %64, %63 : vector<16x16xf32>
    %66 = arith.addf %62, %65 : vector<16x16xf32>
    %67 = vector.extract_strided_slice %1 {offsets = [3, 1], sizes = [16, 16], strides = [1, 1]} : vector<20x20xf32> to vector<16x16xf32>
    %cst_18 = arith.constant 0.054700207 : f32
    %68 = vector.broadcast %cst_18 : f32 to vector<16x16xf32>
    %69 = arith.mulf %68, %67 : vector<16x16xf32>
    %70 = arith.addf %66, %69 : vector<16x16xf32>
    %71 = vector.extract_strided_slice %1 {offsets = [3, 2], sizes = [16, 16], strides = [1, 1]} : vector<20x20xf32> to vector<16x16xf32>
    %cst_19 = arith.constant 0.0683122948 : f32
    %72 = vector.broadcast %cst_19 : f32 to vector<16x16xf32>
    %73 = arith.mulf %72, %71 : vector<16x16xf32>
    %74 = arith.addf %70, %73 : vector<16x16xf32>
    %75 = vector.extract_strided_slice %1 {offsets = [3, 3], sizes = [16, 16], strides = [1, 1]} : vector<20x20xf32> to vector<16x16xf32>
    %cst_20 = arith.constant 0.054700207 : f32
    %76 = vector.broadcast %cst_20 : f32 to vector<16x16xf32>
    %77 = arith.mulf %76, %75 : vector<16x16xf32>
    %78 = arith.addf %74, %77 : vector<16x16xf32>
    %79 = vector.extract_strided_slice %1 {offsets = [3, 4], sizes = [16, 16], strides = [1, 1]} : vector<20x20xf32> to vector<16x16xf32>
    %cst_21 = arith.constant 0.0280840229 : f32
    %80 = vector.broadcast %cst_21 : f32 to vector<16x16xf32>
    %81 = arith.mulf %80, %79 : vector<16x16xf32>
    %82 = arith.addf %78, %81 : vector<16x16xf32>
    %83 = vector.extract_strided_slice %1 {offsets = [4, 0], sizes = [16, 16], strides = [1, 1]} : vector<20x20xf32> to vector<16x16xf32>
    %cst_22 = arith.constant 0.0144188181 : f32
    %84 = vector.broadcast %cst_22 : f32 to vector<16x16xf32>
    %85 = arith.mulf %84, %83 : vector<16x16xf32>
    %86 = arith.addf %82, %85 : vector<16x16xf32>
    %87 = vector.extract_strided_slice %1 {offsets = [4, 1], sizes = [16, 16], strides = [1, 1]} : vector<20x20xf32> to vector<16x16xf32>
    %cst_23 = arith.constant 0.0280840229 : f32
    %88 = vector.broadcast %cst_23 : f32 to vector<16x16xf32>
    %89 = arith.mulf %88, %87 : vector<16x16xf32>
    %90 = arith.addf %86, %89 : vector<16x16xf32>
    %91 = vector.extract_strided_slice %1 {offsets = [4, 2], sizes = [16, 16], strides = [1, 1]} : vector<20x20xf32> to vector<16x16xf32>
    %cst_24 = arith.constant 3.507270e-02 : f32
    %92 = vector.broadcast %cst_24 : f32 to vector<16x16xf32>
    %93 = arith.mulf %92, %91 : vector<16x16xf32>
    %94 = arith.addf %90, %93 : vector<16x16xf32>
    %95 = vector.extract_strided_slice %1 {offsets = [4, 3], sizes = [16, 16], strides = [1, 1]} : vector<20x20xf32> to vector<16x16xf32>
    %cst_25 = arith.constant 0.0280840229 : f32
    %96 = vector.broadcast %cst_25 : f32 to vector<16x16xf32>
    %97 = arith.mulf %96, %95 : vector<16x16xf32>
    %98 = arith.addf %94, %97 : vector<16x16xf32>
    %99 = vector.extract_strided_slice %1 {offsets = [4, 4], sizes = [16, 16], strides = [1, 1]} : vector<20x20xf32> to vector<16x16xf32>
    %cst_26 = arith.constant 0.0144188181 : f32
    %100 = vector.broadcast %cst_26 : f32 to vector<16x16xf32>
    %101 = arith.mulf %100, %99 : vector<16x16xf32>
    %102 = arith.addf %98, %101 : vector<16x16xf32>
    %c0_27 = arith.constant 0 : index
    %c0_28 = arith.constant 0 : index
    %c0_29 = arith.constant 0 : index
    %103 = vector.load %arg2[%c0_27, %c0_28, %c0_29] : memref<1x16x16xf32, #tpu.memory_space<vmem>>, vector<1x16x16xf32>
    %104 = vector.shape_cast %103 : vector<1x16x16xf32> to vector<16x16xf32>
    %105 = vector.shape_cast %102 : vector<16x16xf32> to vector<1x16x16xf32>
    tpu.vector_store %arg2[%c0_27, %c0_28, %c0_29], %105 {strides = array<i32>} : memref<1x16x16xf32, #tpu.memory_space<vmem>>, vector<1x16x16xf32>,
    return
  }
  func.func @transform_0(%arg0: i32) -> (i32, i32, i32) {
    %c0_i32 = arith.constant 0 : i32
    %c0_i32_0 = arith.constant 0 : i32
    %c0_i32_1 = arith.constant 0 : i32
    return %arg0, %c0_i32, %c0_i32_0 : i32, i32, i32
  }
  func.func @transform_1(%arg0: i32) -> (i32, i32, i32) {
    %c0_i32 = arith.constant 0 : i32
    %c0_i32_0 = arith.constant 0 : i32
    %c0_i32_1 = arith.constant 0 : i32
    return %arg0, %c0_i32, %c0_i32_0 : i32, i32, i32
  }
}

module attributes {stable_mosaic.version = 11 : i64} {
  func.func @_grid_sample_kernel(%arg0: i32, %arg1: memref<1x3x256xf32, #tpu.memory_space<vmem>>, %arg2: memref<1x1x256xf32, #tpu.memory_space<vmem>>, %arg3: memref<1x1x256xf32, #tpu.memory_space<vmem>>, %arg4: memref<1x3x256xf32, #tpu.memory_space<vmem>>) attributes {dimension_semantics = [#tpu.dimension_semantics<parallel>], iteration_bounds = array<i64: 2>, scalar_prefetch = 0 : i64, scratch_operands = 0 : i64, tpu.core_type = #tpu.core_type<tc>, window_params = [{transform_indices = @transform_0, window_bounds = array<i64: 1, 3, 256>}, {transform_indices = @transform_1, window_bounds = array<i64: 1, 1, 256>}, {transform_indices = @transform_2, window_bounds = array<i64: 1, 1, 256>}, {transform_indices = @transform_3, window_bounds = array<i64: 1, 3, 256>}]} {
    %c0 = arith.constant 0 : index
    %c0_0 = arith.constant 0 : index
    %c0_1 = arith.constant 0 : index
    %0 = vector.load %arg2[%c0, %c0_0, %c0_1] : memref<1x1x256xf32, #tpu.memory_space<vmem>>, vector<1x1x256xf32>
    %1 = vector.shape_cast %0 : vector<1x1x256xf32> to vector<1x256xf32>
    %c0_2 = arith.constant 0 : index
    %c0_3 = arith.constant 0 : index
    %c0_4 = arith.constant 0 : index
    %2 = vector.load %arg3[%c0_2, %c0_3, %c0_4] : memref<1x1x256xf32, #tpu.memory_space<vmem>>, vector<1x1x256xf32>
    %3 = vector.shape_cast %2 : vector<1x1x256xf32> to vector<1x256xf32>
    %4 = math.floor %1 : vector<1x256xf32>
    %5 = math.floor %3 : vector<1x256xf32>
    %6 = arith.subf %1, %4 : vector<1x256xf32>
    %7 = arith.subf %3, %5 : vector<1x256xf32>
    %cst = arith.constant 1.000000e+00 : f32
    %8 = vector.broadcast %cst : f32 to vector<1x256xf32>
    %9 = arith.subf %8, %6 : vector<1x256xf32>
    %cst_5 = arith.constant 1.000000e+00 : f32
    %10 = vector.broadcast %cst_5 : f32 to vector<1x256xf32>
    %11 = arith.subf %10, %7 : vector<1x256xf32>
    %12 = arith.fptosi %4 : vector<1x256xf32> to vector<1x256xi32>
    %13 = arith.fptosi %5 : vector<1x256xf32> to vector<1x256xi32>
    %c1_i32 = arith.constant 1 : i32
    %14 = vector.broadcast %c1_i32 : i32 to vector<1x256xi32>
    %15 = arith.addi %12, %14 : vector<1x256xi32>
    %c1_i32_6 = arith.constant 1 : i32
    %16 = vector.broadcast %c1_i32_6 : i32 to vector<1x256xi32>
    %17 = arith.addi %13, %16 : vector<1x256xi32>
    %18 = tpu.iota {dimensions = array<i32: 0>} : vector<256x256xi32>
    %19 = arith.mulf %11, %9 : vector<1x256xf32>
    %c0_i32 = arith.constant 0 : i32
    %20 = vector.broadcast %c0_i32 : i32 to vector<1x256xi32>
    %21 = arith.cmpi sge, %12, %20 : vector<1x256xi32>
    %c16_i32 = arith.constant 16 : i32
    %22 = vector.broadcast %c16_i32 : i32 to vector<1x256xi32>
    %23 = arith.cmpi slt, %12, %22 : vector<1x256xi32>
    %24 = arith.andi %21, %23 : vector<1x256xi1>
    %c0_i32_7 = arith.constant 0 : i32
    %25 = vector.broadcast %c0_i32_7 : i32 to vector<1x256xi32>
    %26 = arith.cmpi sge, %13, %25 : vector<1x256xi32>
    %27 = arith.andi %24, %26 : vector<1x256xi1>
    %c16_i32_8 = arith.constant 16 : i32
    %28 = vector.broadcast %c16_i32_8 : i32 to vector<1x256xi32>
    %29 = arith.cmpi slt, %13, %28 : vector<1x256xi32>
    %30 = arith.andi %27, %29 : vector<1x256xi1>
    %cst_9 = arith.constant 0.000000e+00 : f32
    %31 = vector.broadcast %cst_9 : f32 to vector<1x256xf32>
    %32 = arith.select %30, %19, %31 : vector<1x256xi1>, vector<1x256xf32>
    %c16_i32_10 = arith.constant 16 : i32
    %33 = vector.broadcast %c16_i32_10 : i32 to vector<1x256xi32>
    %34 = arith.muli %13, %33 : vector<1x256xi32>
    %35 = arith.addi %34, %12 : vector<1x256xi32>
    %36 = vector.broadcast %35 : vector<1x256xi32> to vector<256x256xi32>
    %37 = arith.cmpi eq, %18, %36 : vector<256x256xi32>
    %cst_11 = arith.constant 0.000000e+00 : f32
    %38 = vector.shape_cast %32 : vector<1x256xf32> to vector<1x256xf32>
    %39 = vector.broadcast %38 : vector<1x256xf32> to vector<256x256xf32>
    %40 = vector.broadcast %cst_11 : f32 to vector<256x256xf32>
    %41 = arith.select %37, %39, %40 : vector<256x256xi1>, vector<256x256xf32>
    %42 = arith.mulf %11, %6 : vector<1x256xf32>
    %c0_i32_12 = arith.constant 0 : i32
    %43 = vector.broadcast %c0_i32_12 : i32 to vector<1x256xi32>
    %44 = arith.cmpi sge, %15, %43 : vector<1x256xi32>
    %c16_i32_13 = arith.constant 16 : i32
    %45 = vector.broadcast %c16_i32_13 : i32 to vector<1x256xi32>
    %46 = arith.cmpi slt, %15, %45 : vector<1x256xi32>
    %47 = arith.andi %44, %46 : vector<1x256xi1>
    %c0_i32_14 = arith.constant 0 : i32
    %48 = vector.broadcast %c0_i32_14 : i32 to vector<1x256xi32>
    %49 = arith.cmpi sge, %13, %48 : vector<1x256xi32>
    %50 = arith.andi %47, %49 : vector<1x256xi1>
    %c16_i32_15 = arith.constant 16 : i32
    %51 = vector.broadcast %c16_i32_15 : i32 to vector<1x256xi32>
    %52 = arith.cmpi slt, %13, %51 : vector<1x256xi32>
    %53 = arith.andi %50, %52 : vector<1x256xi1>
    %cst_16 = arith.constant 0.000000e+00 : f32
    %54 = vector.broadcast %cst_16 : f32 to vector<1x256xf32>
    %55 = arith.select %53, %42, %54 : vector<1x256xi1>, vector<1x256xf32>
    %c16_i32_17 = arith.constant 16 : i32
    %56 = vector.broadcast %c16_i32_17 : i32 to vector<1x256xi32>
    %57 = arith.muli %13, %56 : vector<1x256xi32>
    %58 = arith.addi %57, %15 : vector<1x256xi32>
    %59 = vector.broadcast %58 : vector<1x256xi32> to vector<256x256xi32>
    %60 = arith.cmpi eq, %18, %59 : vector<256x256xi32>
    %cst_18 = arith.constant 0.000000e+00 : f32
    %61 = vector.shape_cast %55 : vector<1x256xf32> to vector<1x256xf32>
    %62 = vector.broadcast %61 : vector<1x256xf32> to vector<256x256xf32>
    %63 = vector.broadcast %cst_18 : f32 to vector<256x256xf32>
    %64 = arith.select %60, %62, %63 : vector<256x256xi1>, vector<256x256xf32>
    %65 = arith.addf %41, %64 : vector<256x256xf32>
    %66 = arith.mulf %7, %9 : vector<1x256xf32>
    %c0_i32_19 = arith.constant 0 : i32
    %67 = vector.broadcast %c0_i32_19 : i32 to vector<1x256xi32>
    %68 = arith.cmpi sge, %12, %67 : vector<1x256xi32>
    %c16_i32_20 = arith.constant 16 : i32
    %69 = vector.broadcast %c16_i32_20 : i32 to vector<1x256xi32>
    %70 = arith.cmpi slt, %12, %69 : vector<1x256xi32>
    %71 = arith.andi %68, %70 : vector<1x256xi1>
    %c0_i32_21 = arith.constant 0 : i32
    %72 = vector.broadcast %c0_i32_21 : i32 to vector<1x256xi32>
    %73 = arith.cmpi sge, %17, %72 : vector<1x256xi32>
    %74 = arith.andi %71, %73 : vector<1x256xi1>
    %c16_i32_22 = arith.constant 16 : i32
    %75 = vector.broadcast %c16_i32_22 : i32 to vector<1x256xi32>
    %76 = arith.cmpi slt, %17, %75 : vector<1x256xi32>
    %77 = arith.andi %74, %76 : vector<1x256xi1>
    %cst_23 = arith.constant 0.000000e+00 : f32
    %78 = vector.broadcast %cst_23 : f32 to vector<1x256xf32>
    %79 = arith.select %77, %66, %78 : vector<1x256xi1>, vector<1x256xf32>
    %c16_i32_24 = arith.constant 16 : i32
    %80 = vector.broadcast %c16_i32_24 : i32 to vector<1x256xi32>
    %81 = arith.muli %17, %80 : vector<1x256xi32>
    %82 = arith.addi %81, %12 : vector<1x256xi32>
    %83 = vector.broadcast %82 : vector<1x256xi32> to vector<256x256xi32>
    %84 = arith.cmpi eq, %18, %83 : vector<256x256xi32>
    %cst_25 = arith.constant 0.000000e+00 : f32
    %85 = vector.shape_cast %79 : vector<1x256xf32> to vector<1x256xf32>
    %86 = vector.broadcast %85 : vector<1x256xf32> to vector<256x256xf32>
    %87 = vector.broadcast %cst_25 : f32 to vector<256x256xf32>
    %88 = arith.select %84, %86, %87 : vector<256x256xi1>, vector<256x256xf32>
    %89 = arith.addf %65, %88 : vector<256x256xf32>
    %90 = arith.mulf %7, %6 : vector<1x256xf32>
    %c0_i32_26 = arith.constant 0 : i32
    %91 = vector.broadcast %c0_i32_26 : i32 to vector<1x256xi32>
    %92 = arith.cmpi sge, %15, %91 : vector<1x256xi32>
    %c16_i32_27 = arith.constant 16 : i32
    %93 = vector.broadcast %c16_i32_27 : i32 to vector<1x256xi32>
    %94 = arith.cmpi slt, %15, %93 : vector<1x256xi32>
    %95 = arith.andi %92, %94 : vector<1x256xi1>
    %c0_i32_28 = arith.constant 0 : i32
    %96 = vector.broadcast %c0_i32_28 : i32 to vector<1x256xi32>
    %97 = arith.cmpi sge, %17, %96 : vector<1x256xi32>
    %98 = arith.andi %95, %97 : vector<1x256xi1>
    %c16_i32_29 = arith.constant 16 : i32
    %99 = vector.broadcast %c16_i32_29 : i32 to vector<1x256xi32>
    %100 = arith.cmpi slt, %17, %99 : vector<1x256xi32>
    %101 = arith.andi %98, %100 : vector<1x256xi1>
    %cst_30 = arith.constant 0.000000e+00 : f32
    %102 = vector.broadcast %cst_30 : f32 to vector<1x256xf32>
    %103 = arith.select %101, %90, %102 : vector<1x256xi1>, vector<1x256xf32>
    %c16_i32_31 = arith.constant 16 : i32
    %104 = vector.broadcast %c16_i32_31 : i32 to vector<1x256xi32>
    %105 = arith.muli %17, %104 : vector<1x256xi32>
    %106 = arith.addi %105, %15 : vector<1x256xi32>
    %107 = vector.broadcast %106 : vector<1x256xi32> to vector<256x256xi32>
    %108 = arith.cmpi eq, %18, %107 : vector<256x256xi32>
    %cst_32 = arith.constant 0.000000e+00 : f32
    %109 = vector.shape_cast %103 : vector<1x256xf32> to vector<1x256xf32>
    %110 = vector.broadcast %109 : vector<1x256xf32> to vector<256x256xf32>
    %111 = vector.broadcast %cst_32 : f32 to vector<256x256xf32>
    %112 = arith.select %108, %110, %111 : vector<256x256xi1>, vector<256x256xf32>
    %113 = arith.addf %89, %112 : vector<256x256xf32>
    %c0_33 = arith.constant 0 : index
    %c0_34 = arith.constant 0 : index
    %c0_35 = arith.constant 0 : index
    %114 = vector.load %arg1[%c0_33, %c0_34, %c0_35] : memref<1x3x256xf32, #tpu.memory_space<vmem>>, vector<1x3x256xf32>
    %115 = vector.shape_cast %114 : vector<1x3x256xf32> to vector<3x256xf32>
    %cst_36 = arith.constant dense<0.000000e+00> : vector<3x256xf32>
    %116 = tpu.matmul %115, %113, %cst_36 {dimension_numbers = #tpu.dot_dimension_numbers<[1], [0], [0], [1], [0, 0, 1, 1], [], []>} : vector<3x256xf32>, vector<256x256xf32>, vector<3x256xf32> -> vector<3x256xf32>
    %c0_37 = arith.constant 0 : index
    %c0_38 = arith.constant 0 : index
    %c0_39 = arith.constant 0 : index
    %117 = vector.load %arg4[%c0_37, %c0_38, %c0_39] : memref<1x3x256xf32, #tpu.memory_space<vmem>>, vector<1x3x256xf32>
    %118 = vector.shape_cast %117 : vector<1x3x256xf32> to vector<3x256xf32>
    %119 = vector.shape_cast %116 : vector<3x256xf32> to vector<1x3x256xf32>
    tpu.vector_store %arg4[%c0_37, %c0_38, %c0_39], %119 {strides = array<i32>} : memref<1x3x256xf32, #tpu.memory_space<vmem>>, vector<1x3x256xf32>,
    return
  }
  func.func @transform_0(%arg0: i32) -> (i32, i32, i32) {
    %c0_i32 = arith.constant 0 : i32
    %c0_i32_0 = arith.constant 0 : i32
    %c0_i32_1 = arith.constant 0 : i32
    return %arg0, %c0_i32, %c0_i32_0 : i32, i32, i32
  }
  func.func @transform_1(%arg0: i32) -> (i32, i32, i32) {
    %c0_i32 = arith.constant 0 : i32
    %c0_i32_0 = arith.constant 0 : i32
    %c0_i32_1 = arith.constant 0 : i32
    return %arg0, %c0_i32, %c0_i32_0 : i32, i32, i32
  }
  func.func @transform_2(%arg0: i32) -> (i32, i32, i32) {
    %c0_i32 = arith.constant 0 : i32
    %c0_i32_0 = arith.constant 0 : i32
    %c0_i32_1 = arith.constant 0 : i32
    return %arg0, %c0_i32, %c0_i32_0 : i32, i32, i32
  }
  func.func @transform_3(%arg0: i32) -> (i32, i32, i32) {
    %c0_i32 = arith.constant 0 : i32
    %c0_i32_0 = arith.constant 0 : i32
    %c0_i32_1 = arith.constant 0 : i32
    return %arg0, %c0_i32, %c0_i32_0 : i32, i32, i32
  }
}

</mosaic_0001>

<bundles_post_ra>
// kernel: stable_grad_rot_forward.2
= control target key start
LH: loop header
LB: loop body
LE: loop exit
PB: predicated region body
PF: predicated region fallthrough
CT: control target
= control target key end

     0   :  { %s502_s6 = smov 0   ;;  %s693_s0 = inlined_call_operand.vmem [shape: f32[6,20,20], index: 0, kind: input, shape index: {}]   ;;  %s694_s1 = inlined_call_operand.vmem [shape: f32[6,16,16], index: 1, kind: output, shape index: {}]  }
   0x1 LB: > { %s456_s7 = sadd.s32 4294967295, %s486_s6   ;;  %p460_p0 = scmp.ge.s32.totalorder %s486_s6, 1  ;;  %s486_s6 = sphi %s502_s6, %s11_s6  }
   0x2   : > { %p87_p1 = scmp.lt.s32.totalorder %s486_s6, 7 }
   0x4   : > { %p88_p2 = pnand %p460_p0, %p87_p1 }
   0x5   : > { %p107_p3 = scmp.lt.s32.totalorder (!%p88_p2), %s456_s7, 5  ;;  %s488_s12 = smov (!%p88_p2), 126  }
   0x6   : > { %91 = sbr.rel (%p88_p2) target bundleno = 212 (0xd4), region = 24  ;;  %s489_s13 = smov (!%p88_p2), 127  }
   0x7   : > { %s490_s14 = smov (!%p88_p2), 125   ;;  %s491_s15 = smov (!%p88_p2), 124  }
   0xb   : > { %s696_s7 = smov (!%p107_p3, %s456_s7), 5  ;;  %vm168_vm0 = vcmask 1046528   ;;  %vm234_vm1 = vcmask 1045504   ;;  %vm292_vm2 = vcmask 1044480   ;;  %vm346_vm3 = vcmask 1043456  }
   0xc   : > { %s467_s8 = smul.u32 24, %s696_s7  ;;  %s466_s16 = sshll.u32 %s696_s7, 4  ;;  %vm398_vm4 = vcmask 130048  }
   0xd   : > { %s116_s19 = scalar_lea.vmem %s694_s1, %s466_s16 }
   0xe   : > { %s111_s11 = scalar_lea.vmem %s693_s0, %s467_s8 }
   0xf   : > { %v117_v0 = vld [vmem:[%s111_s11] sm:$0xff]  ;;  %v118_v1 = vld [vmem:[%s111_s11 + $0x8] sm:$0xff]  ;;  %v528_v6 = vld [vmem:[%s111_s11 + $0x10] sm:$0xf] }
  0x10   : > { %v516_v2 = vmul.f32 0.0350727, %v117_v0  ;;  %v518_v3 = vmul.f32 0.028084023, %v117_v0  ;;  %v524_v4 = vmul.f32 0.0350727, %v118_v1 }
  0x11   : > { %v526_v5 = vmul.f32 0.028084023, %v118_v1  ;;  %v534_v7 = vmul.f32 0.054700207, %v118_v1  ;;  %v537_v8 = vmul.f32 0.054700207, %v528_v6 }
  0x12   : > { %140 = vrot.lane.b32.xlu1 %v516_v2, %s488_s12  ;;  %128 = vrot.lane.b32.xlu0 %v518_v3, %s489_s13  ;;  %v539_v9 = vmul.f32 0.054700207, %v117_v0  ;;  %v541_v10 = vmul.f32 0.014418818, %v118_v1  ;;  %v547_v11 = vmul.f32 0.014418818, %v117_v0 }
  0x13   : > { %v549_v12 = vmul.f32 0.068312295, %v118_v1  ;;  %v552_v13 = vmul.f32 0.068312295, %v528_v6  ;;  %v185_v14 = vrot.slane %v534_v7, 1  ;;  %v187_v15 = vrot.slane %v537_v8, 1 }
  0x14   : > { %v184_v16 = vrot.slane %v539_v9, 1  ;;  %v557_v17 = vmul.f32 0.068312295, %v117_v0  ;;  %v571_v23 = vmul.f32 0.028084023, %v528_v6  ;;  %v170_v26 = vrot.slane %v526_v5, 1 }
  0x15   : > { %v204_v18 = vrot.slane %v549_v12, 1  ;;  %v188_v19 = vsel %vm168_vm0, %v185_v14, %v187_v15  ;;  %v206_v21 = vrot.slane %v552_v13, 1  ;;  %v169_v28 = vrot.slane %v518_v3, 1 }
  0x16   : > { %142 = vrot.lane.b32.xlu1 %v524_v4, %s488_s12  ;;  %130 = vrot.lane.b32.xlu0 %v526_v5, %s489_s13  ;;  %v186_v20 = vsel %vm168_vm0, %v184_v16, %v185_v14  ;;  %v203_v22 = vrot.slane %v557_v17, 1  ;;  %v172_v27 = vrot.slane %v571_v23, 1  ;;  %v245_v30 = vrot.slane %v549_v12, 2 }
  0x17   : > { %v207_v24 = vsel %vm168_vm0, %v204_v18, %v206_v21  ;;  %v247_v31 = vrot.slane %v552_v13, 2  ;;  %v244_v32 = vrot.slane %v557_v17, 2  ;;  %v589_v33 = vsel %vm168_vm0, %v169_v28, %v170_v26 }
  0x18   : > { %v205_v25 = vsel %vm168_vm0, %v203_v22, %v204_v18  ;;  %v583_v29 = vsel %vm168_vm0, %v170_v26, %v172_v27  ;;  %v258_v34 = vmul.f32 0.08531173, %v118_v1  ;;  %v259_v35 = vmul.f32 0.08531173, %v528_v6 }
  0x19   : > { %v257_v36 = vmul.f32 0.08531173, %v117_v0  ;;  %v248_v37 = vsel %vm234_vm1, %v245_v30, %v247_v31  ;;  %v246_v38 = vsel %vm234_vm1, %v244_v32, %v245_v30  ;;  %v232_v44 = vmul.f32 0.0350727, %v528_v6 }
  0x1a   : > { %150 = vrot.lane.b32.xlu1 %v526_v5, %s490_s14  ;;  %148 = vrot.lane.b32.xlu0 %v518_v3, %s490_s14  ;;  %v264_v39 = vrot.slane %v258_v34, 2  ;;  %v266_v40 = vrot.slane %v259_v35, 2  ;;  %v236_v45 = vrot.slane %v524_v4, 2  ;;  %v235_v47 = vrot.slane %v516_v2, 2 }
  0x1b   : > { %v263_v41 = vrot.slane %v257_v36, 2  ;;  %v238_v46 = vrot.slane %v232_v44, 2  ;;  %v303_v48 = vrot.slane %v534_v7, 3  ;;  %v305_v51 = vrot.slane %v537_v8, 3 }
  0x1c   : > { %v267_v42 = vsel %vm234_vm1, %v264_v39, %v266_v40  ;;  %v614_v50 = vsel %vm234_vm1, %v235_v47, %v236_v45  ;;  %v302_v52 = vrot.slane %v539_v9, 3  ;;  %v316_v53 = vrot.slane %v549_v12, 3 }
  0x1d   : > { %v265_v43 = vsel %vm234_vm1, %v263_v41, %v264_v39  ;;  %v611_v49 = vsel %vm234_vm1, %v236_v45, %v238_v46  ;;  %v306_v54 = vsel %vm292_vm2, %v303_v48, %v305_v51  ;;  %v318_v56 = vrot.slane %v552_v13, 3 }
  0x1e   : > { %160 = vrot.lane.b32.xlu1 %v541_v10, %s491_s15  ;;  %158 = vrot.lane.b32.xlu0 %v547_v11, %s491_s15  ;;  %v304_v55 = vsel %vm292_vm2, %v302_v52, %v303_v48  ;;  %v315_v57 = vrot.slane %v557_v17, 3  ;;  %v294_v60 = vrot.slane %v526_v5, 3  ;;  %v296_v61 = vrot.slane %v571_v23, 3 }
  0x1f   : > { %v319_v58 = vsel %vm292_vm2, %v316_v53, %v318_v56  ;;  %v293_v62 = vrot.slane %v518_v3, 3  ;;  %v357_v63 = vrot.slane %v526_v5, 4  ;;  %v359_v7 = vrot.slane %v571_v23, 4 }
  0x20   : > { %v317_v59 = vsel %vm292_vm2, %v315_v57, %v316_v53  ;;  %v640_v0 = vsel %vm292_vm2, %v294_v60, %v296_v61  ;;  %v356_v8 = vrot.slane %v518_v3, 4  ;;  %v370_v9 = vrot.slane %v524_v4, 4 }
  0x21   : > { %v643_v1 = vsel %vm292_vm2, %v293_v62, %v294_v60  ;;  %v360_v5 = vsel %vm346_vm3, %v357_v63, %v359_v7  ;;  %v372_v13 = vrot.slane %v232_v44, 4  ;;  %v369_v14 = vrot.slane %v516_v2, 4 }
  0x22   : > { %191 = vrot.lane.b32.xlu1 %v188_v19, %s489_s13  ;;  %189 = vrot.lane.b32.xlu0 %v186_v20, %s489_s13  ;;  %v358_v12 = vsel %vm346_vm3, %v356_v8, %v357_v63  ;;  %v344_v16 = vmul.f32 0.014418818, %v528_v6  ;;  %v348_v4 = vrot.slane %v541_v10, 4  ;;  %v347_v18 = vrot.slane %v547_v11, 4 }
  0x23   : > { %v373_v3 = vsel %vm346_vm3, %v370_v9, %v372_v13  ;;  %v371_v15 = vsel %vm346_vm3, %v369_v14, %v370_v9 }
  0x24   : > { %v350_v17 = vrot.slane %v344_v16, 4 }
  0x26   : > { %210 = vrot.lane.b32.xlu1 %v207_v24, %s488_s12  ;;  %208 = vrot.lane.b32.xlu0 %v205_v25, %s488_s12  ;;  %v667_v2 = vsel %vm346_vm3, %v348_v4, %v350_v17 }
  0x2a   : > { %218 = vrot.lane.b32.xlu1 %v188_v19, %s490_s14  ;;  %216 = vrot.lane.b32.xlu0 %v186_v20, %s490_s14  ;;  %v670_v19 = vsel %vm346_vm3, %v347_v18, %v348_v4 }
  0x2e   : > { %226 = vrot.lane.b32.xlu1 %v583_v29, %s491_s15  ;;  %224 = vrot.lane.b32.xlu0 %v589_v33, %s491_s15 }
  0x32   : > { %251 = vrot.lane.b32.xlu1 %v248_v37, %s489_s13  ;;  %249 = vrot.lane.b32.xlu0 %v246_v38, %s489_s13 }
  0x36   : > { %270 = vrot.lane.b32.xlu1 %v267_v42, %s488_s12  ;;  %268 = vrot.lane.b32.xlu0 %v265_v43, %s488_s12 }
  0x3a   : > { %278 = vrot.lane.b32.xlu1 %v248_v37, %s490_s14  ;;  %276 = vrot.lane.b32.xlu0 %v246_v38, %s490_s14 }
  0x3e   : > { %286 = vrot.lane.b32.xlu1 %v611_v49, %s491_s15  ;;  %284 = vrot.lane.b32.xlu0 %v614_v50, %s491_s15 }
  0x42   : > { %309 = vrot.lane.b32.xlu1 %v306_v54, %s489_s13  ;;  %307 = vrot.lane.b32.xlu0 %v304_v55, %s489_s13 }
  0x46   : > { %322 = vrot.lane.b32.xlu1 %v319_v58, %s488_s12  ;;  %320 = vrot.lane.b32.xlu0 %v317_v59, %s488_s12 }
  0x4a   : > { %330 = vrot.lane.b32.xlu1 %v306_v54, %s490_s14  ;;  %328 = vrot.lane.b32.xlu0 %v304_v55, %s490_s14 }
  0x4e   : > { %338 = vrot.lane.b32.xlu1 %v640_v0, %s491_s15  ;;  %336 = vrot.lane.b32.xlu0 %v643_v1, %s491_s15 }
  0x52   : > { %363 = vrot.lane.b32.xlu1 %v360_v5, %s489_s13  ;;  %361 = vrot.lane.b32.xlu0 %v358_v12, %s489_s13 }
  0x56   : > { %376 = vrot.lane.b32.xlu1 %v373_v3, %s488_s12  ;;  %374 = vrot.lane.b32.xlu0 %v371_v15, %s488_s12 }
  0x5a   : > { %384 = vrot.lane.b32.xlu1 %v360_v5, %s490_s14  ;;  %382 = vrot.lane.b32.xlu0 %v358_v12, %s490_s14 }
  0x5e   : > { %392 = vrot.lane.b32.xlu1 %v667_v2, %s491_s15  ;;  %390 = vrot.lane.b32.xlu0 %v670_v19, %s491_s15 }
  0x84   : > { %v141_v6 = vpop.permute.xlu1 %140  ;;  %v129_v20 = vpop.permute.xlu0 %128 }
  0x85   : > { %v134_v28 = vadd.f32 %v129_v20, %v547_v11 }
  0x87   : > { %v146_v34 = vadd.f32 %v141_v6, %v134_v28 }
  0x88   : > { %v143_v21 = vpop.permute.xlu1 %142  ;;  %v131_v22 = vpop.permute.xlu0 %130 }
  0x89   : > { %v135_v25 = vadd.f32 %v131_v22, %v541_v10 }
  0x8b   : > { %v147_v30 = vadd.f32 %v143_v21, %v135_v25 }
  0x8c   : > { %v151_v23 = vpop.permute.xlu1 %150  ;;  %v149_v24 = vpop.permute.xlu0 %148 }
  0x8d   : > { %v155_v35 = vadd.f32 %v151_v23, %v147_v30  ;;  %v154_v36 = vadd.f32 %v149_v24, %v146_v34 }
  0x90   : > { %v161_v26 = vpop.permute.xlu1 %160  ;;  %v159_v27 = vpop.permute.xlu0 %158 }
  0x91   : > { %v165_v39 = vadd.f32 %v161_v26, %v155_v35  ;;  %v164_v40 = vadd.f32 %v159_v27, %v154_v36 }
  0x93   : > { %v177_v43 = vadd.f32 %v583_v29, %v165_v39  ;;  %v176_v10 = vadd.f32 %v589_v33, %v164_v40 }
  0x94   : > { %v192_v31 = vpop.permute.xlu1 %191  ;;  %v190_v32 = vpop.permute.xlu0 %189 }
  0x95   : > { %v196_v46 = vadd.f32 %v192_v31, %v177_v43  ;;  %v195_v11 = vadd.f32 %v190_v32, %v176_v10 }
  0x98   : > { %v211_v37 = vpop.permute.xlu1 %210  ;;  %v209_v38 = vpop.permute.xlu0 %208 }
  0x99   : > { %v215_v47 = vadd.f32 %v211_v37, %v196_v46  ;;  %v214_v48 = vadd.f32 %v209_v38, %v195_v11 }
  0x9c   : > { %v219_v41 = vpop.permute.xlu1 %218  ;;  %v217_v42 = vpop.permute.xlu0 %216 }
  0x9d   : > { %v223_v53 = vadd.f32 %v219_v41, %v215_v47  ;;  %v222_v54 = vadd.f32 %v217_v42, %v214_v48 }
  0xa0   : > { %v227_v44 = vpop.permute.xlu1 %226  ;;  %v225_v45 = vpop.permute.xlu0 %224 }
  0xa1   : > { %v231_v55 = vadd.f32 %v227_v44, %v223_v53  ;;  %v230_v56 = vadd.f32 %v225_v45, %v222_v54 }
  0xa3   : > { %v243_v59 = vadd.f32 %v611_v49, %v231_v55  ;;  %v242_v29 = vadd.f32 %v614_v50, %v230_v56 }
  0xa4   : > { %v252_v51 = vpop.permute.xlu1 %251  ;;  %v250_v52 = vpop.permute.xlu0 %249 }
  0xa5   : > { %v256_v61 = vadd.f32 %v252_v51, %v243_v59  ;;  %v255_v62 = vadd.f32 %v250_v52, %v242_v29 }
  0xa8   : > { %v271_v57 = vpop.permute.xlu1 %270  ;;  %v269_v58 = vpop.permute.xlu0 %268 }
  0xa9   : > { %v275_v8 = vadd.f32 %v271_v57, %v256_v61  ;;  %v274_v9 = vadd.f32 %v269_v58, %v255_v62 }
  0xac   : > { %v279_v60 = vpop.permute.xlu1 %278  ;;  %v277_v33 = vpop.permute.xlu0 %276 }
  0xad   : > { %v283_v5 = vadd.f32 %v279_v60, %v275_v8  ;;  %v282_v12 = vadd.f32 %v277_v33, %v274_v9 }
  0xb0   : > { %v287_v63 = vpop.permute.xlu1 %286  ;;  %v285_v7 = vpop.permute.xlu0 %284 }
  0xb1   : > { %v291_v3 = vadd.f32 %v287_v63, %v283_v5  ;;  %v290_v15 = vadd.f32 %v285_v7, %v282_v12 }
  0xb3   : > { %v301_v49 = vadd.f32 %v640_v0, %v291_v3  ;;  %v300_v50 = vadd.f32 %v643_v1, %v290_v15 }
  0xb4   : > { %v310_v13 = vpop.permute.xlu1 %309  ;;  %v308_v14 = vpop.permute.xlu0 %307 }
  0xb5   : > { %v314_v6 = vadd.f32 %v310_v13, %v301_v49  ;;  %v313_v20 = vadd.f32 %v308_v14, %v300_v50 }
  0xb8   : > { %v323_v16 = vpop.permute.xlu1 %322  ;;  %v321_v4 = vpop.permute.xlu0 %320 }
  0xb9   : > { %v327_v21 = vadd.f32 %v323_v16, %v314_v6  ;;  %v326_v22 = vadd.f32 %v321_v4, %v313_v20 }
  0xbc   : > { %v331_v17 = vpop.permute.xlu1 %330  ;;  %v329_v18 = vpop.permute.xlu0 %328 }
  0xbd   : > { %v335_v25 = vadd.f32 %v331_v17, %v327_v21  ;;  %v334_v26 = vadd.f32 %v329_v18, %v326_v22 }
  0xc0   : > { %v339_v23 = vpop.permute.xlu1 %338  ;;  %v337_v24 = vpop.permute.xlu0 %336 }
  0xc1   : > { %v343_v27 = vadd.f32 %v339_v23, %v335_v25  ;;  %v342_v28 = vadd.f32 %v337_v24, %v334_v26 }
  0xc3   : > { %v355_v32 = vadd.f32 %v667_v2, %v343_v27  ;;  %v354_v0 = vadd.f32 %v670_v19, %v342_v28 }
  0xc4   : > { %v364_v30 = vpop.permute.xlu1 %363  ;;  %v362_v31 = vpop.permute.xlu0 %361 }
  0xc5   : > { %v368_v35 = vadd.f32 %v364_v30, %v355_v32  ;;  %v367_v36 = vadd.f32 %v362_v31, %v354_v0 }
  0xc8   : > { %v377_v1 = vpop.permute.xlu1 %376  ;;  %v375_v34 = vpop.permute.xlu0 %374 }
  0xc9   : > { %v381_v39 = vadd.f32 %v377_v1, %v368_v35  ;;  %v380_v40 = vadd.f32 %v375_v34, %v367_v36 }
  0xcc   : > { %v385_v37 = vpop.permute.xlu1 %384  ;;  %v383_v38 = vpop.permute.xlu0 %382 }
  0xcd   : > { %v389_v41 = vadd.f32 %v385_v37, %v381_v39  ;;  %v388_v42 = vadd.f32 %v383_v38, %v380_v40 }
  0xd0   : > { %v393_v43 = vpop.permute.xlu1 %392  ;;  %v391_v2 = vpop.permute.xlu0 %390 }
  0xd1   : > { %v397_v10 = vadd.f32 %v393_v43, %v389_v41  ;;  %v396_v19 = vadd.f32 %v391_v2, %v388_v42 }
  0xd3   : > { %400 = vst.msk [vmem:[%s116_s19 + $0x8] sm:$0xff] %vm398_vm4, %v397_v10  ;;  %399 = vst.msk [vmem:[%s116_s19] sm:$0xff] %vm398_vm4, %v396_v19 }
  0xd4 PF: > { %s11_s6 = sadd.s32 1, %s486_s6  }
  0xd5   : > { %p8_p4 = scmp.ge.s32.totalorder %s11_s6, 8  }
  0xd7   :  { %10 = sbr.rel (!%p8_p4) target bundleno = 1 (0x1), region = 54 }

// kernel: stable_grad_rot_forward.3
= control target key start
LH: loop header
LB: loop body
LE: loop exit
PB: predicated region body
PF: predicated region fallthrough
CT: control target
= control target key end

     0   :  { %s1277_s12 = smov 0   ;;  %s2214_s0 = inlined_call_operand.vmem [shape: f32[2,3,256], index: 0, kind: input, shape index: {}]   ;;  %s2215_s1 = inlined_call_operand.vmem [shape: f32[2,1,256], index: 1, kind: input, shape index: {}]   ;;  %s2216_s2 = inlined_call_operand.vmem [shape: f32[2,1,256], index: 2, kind: input, shape index: {}]   ;;  %s2217_s3 = inlined_call_operand.vmem [shape: f32[2,3,256], index: 3, kind: output, shape index: {}]  }
   0x1 LB: > { %s1221_s13 = sadd.s32 4294967295, %s1255_s12   ;;  %p1225_p0 = scmp.ge.s32.totalorder %s1255_s12, 1  ;;  %s1255_s12 = sphi %s1277_s12, %s13_s12  }
   0x2   : > { %p155_p1 = scmp.lt.s32.totalorder %s1255_s12, 3 }
   0x4   : > { %p156_p2 = pnand %p1225_p0, %p155_p1 }
   0x5   : > { %p187_p3 = scmp.lt.s32.totalorder (!%p156_p2), %s1221_s13, 1 }
   0x6   : > { %159 = sbr.rel (%p156_p2) target bundleno = 416 (0x1a0), region = 32 }
   0xb   : > { %v217_v0 = vlaneseq  ;;  %s2223_s13 = smov (!%p187_p3, %s1221_s13), 1 }
   0xc   : > { %s1228_s14 = sshll.u32 %s2223_s13, 1  ;;  %s1234_s21 = sshll.u32 %s2223_s13, 3 }
   0xd   : > { %v1287_v1 = vshrl.u32 %v217_v0, 7  ;;  %s195_s17 = scalar_lea.vmem %s2215_s1, %s1228_s14  ;;  %s199_s20 = scalar_lea.vmem %s2216_s2, %s1228_s14 }
   0xe   : > { %v205_v9 = vld [vmem:[%s195_s17] sm:$0x3]  ;;  %s191_s24 = scalar_lea.vmem %s2214_s0, %s1234_s21  ;;  %s204_s27 = scalar_lea.vmem %s2217_s3, %s1234_s21 }
   0xf   : > { %v1291_v2 = vadd.s32 120, %v1287_v1  ;;  %v1294_v3 = vsub.s32 1, %v1287_v1  ;;  %v1297_v4 = vsub.s32 0, %v1287_v1  ;;  %v1306_v5 = vadd.s32 112, %v1287_v1  ;;  %v206_v10 = vld [vmem:[%s199_s20] sm:$0x3] }
  0x10   : > { %v1309_v6 = vadd.s32 104, %v1287_v1  ;;  %v1312_v7 = vadd.s32 96, %v1287_v1  ;;  %v1315_v8 = vadd.s32 88, %v1287_v1  ;;  %v1318_v11 = vadd.s32 80, %v1287_v1 }
  0x11   : > { %v1321_v12 = vadd.s32 72, %v1287_v1  ;;  %v207_v13 = vfloor.f32 %v205_v9  ;;  %v208_v14 = vfloor.f32 %v206_v10  ;;  %v1324_v15 = vadd.s32 64, %v1287_v1 }
  0x12   : > { %v1327_v16 = vadd.s32 56, %v1287_v1  ;;  %v1330_v17 = vadd.s32 48, %v1287_v1  ;;  %v1333_v18 = vadd.s32 40, %v1287_v1  ;;  %v1336_v19 = vadd.s32 32, %v1287_v1 }
  0x13   : > { %v1339_v20 = vadd.s32 24, %v1287_v1  ;;  %v209_v21 = vsub.f32 %v205_v9, %v207_v13  ;;  %v210_v22 = vsub.f32 %v206_v10, %v208_v14  ;;  %v1236_v23 = vtrunc.f32 %v207_v13 }
  0x14   : > { %v1238_v24 = vtrunc.f32 %v208_v14  ;;  %v1342_v25 = vadd.s32 16, %v1287_v1  ;;  %v1345_v26 = vadd.s32 8, %v1287_v1  ;;  %v1348_v27 = vadd.s32 248, %v1287_v1 }
  0x15   : > { %v1351_v28 = vadd.s32 240, %v1287_v1  ;;  %v211_v29 = vsub.f32 1.0, %v209_v21  ;;  %v212_v30 = vsub.f32 1.0, %v210_v22  ;;  %v1237_v31 = vcvt.f32.s32 %v1236_v23 }
  0x16   : > { %v1239_v32 = vcvt.f32.s32 %v1238_v24  ;;  %v1353_v33 = vmul.f32 %v210_v22, %v209_v21  ;;  %v1356_v34 = vadd.s32 232, %v1287_v1  ;;  %v1359_v35 = vadd.s32 224, %v1287_v1 }
  0x17   : > { %v1362_v36 = vadd.s32 216, %v1287_v1  ;;  %v215_v37 = vadd.s32 1, %v1237_v31  ;;  %v250_v39 = vmul.f32 %v212_v30, %v211_v29  ;;  %vm251_vm0 = vcmp.ge.s32.totalorder %v1237_v31, 0 }
  0x18   : > { %v216_v38 = vadd.s32 1, %v1239_v32  ;;  %vm252_vm1 = vcmp.lt.s32.totalorder %v1237_v31, 16  ;;  %vm254_vm2 = vcmp.ge.s32.totalorder %v1239_v32, 0  ;;  %vm256_vm3 = vcmp.lt.s32.totalorder %v1239_v32, 16 }
  0x19   : > { %v259_v40 = vmul.u32 16, %v1239_v32  ;;  %vm1364_vm4 = vmand %vm251_vm0, %vm252_vm1  ;;  %v408_v42 = vmul.f32 %v212_v30, %v209_v21  ;;  %vm409_vm5 = vcmp.ge.s32.totalorder %v215_v37, 0  ;;  %vm410_vm6 = vcmp.lt.s32.totalorder %v215_v37, 16 }
  0x1a   : > { %v1369_v43 = vadd.s32 208, %v1287_v1  ;;  %vm255_vm7 = vmand %vm1364_vm4, %vm254_vm2  ;;  %v627_v46 = vmul.f32 %v211_v29, %v210_v22  ;;  %vm628_vm8 = vcmp.ge.s32.totalorder %v216_v38, 0  ;;  %vm630_vm10 = vcmp.lt.s32.totalorder %v216_v38, 16 }
  0x1b   : > { %v260_v44 = vadd.s32 %v1237_v31, %v259_v40  ;;  %v415_v45 = vadd.s32 %v259_v40, %v215_v37  ;;  %vm257_vm9 = vmand %vm255_vm7, %vm256_vm3  ;;  %v633_v47 = vmul.u32 16, %v216_v38  ;;  %v1376_v48 = vadd.s32 200, %v1287_v1 }
  0x1c   : > { %v1379_v49 = vadd.s32 192, %v1287_v1  ;;  %v258_v50 = vsel %vm257_vm9, %v250_v39, 0.0  ;;  %vm1385_vm11 = vmand %vm409_vm5, %vm410_vm6 }
  0x1d   : > { %v1382_v51 = vrot.slane %v260_v44, %v1294_v3  ;;  %v1390_v53 = vrot.slane %v415_v45, %v1294_v3  ;;  %v1393_v54 = vrot.slane %v260_v44, %v1297_v4  ;;  %v1396_v55 = vrot.slane %v258_v50, %v1294_v3  ;;  %vm412_vm12 = vmand %vm1385_vm11, %vm254_vm2 }
  0x1e   : > { %v634_v56 = vadd.s32 %v1237_v31, %v633_v47  ;;  %v850_v57 = vadd.s32 %v633_v47, %v215_v37  ;;  %v1402_v58 = vrot.slane %v258_v50, %v1297_v4  ;;  %vm413_vm14 = vmand %vm412_vm12, %vm256_vm3  ;;  %v1412_v59 = vrot.slane %v415_v45, %v1297_v4 }
  0x1f   : > { %vm300_vm13 = vcmp.eq.s32.totalorder %v1291_v2, %v1382_v51  ;;  %vm455_vm15 = vcmp.eq.s32.totalorder %v1291_v2, %v1390_v53  ;;  %vm299_vm0 = vcmp.eq.s32.totalorder %v1291_v2, %v1393_v54  ;;  %v414_v61 = vsel %vm413_vm14, %v408_v42, 0.0  ;;  %vm629_vm1 = vmand %vm1364_vm4, %vm628_vm8 }
  0x20   : > { %v375_v60 = vsel %vm300_vm13, %v1396_v55, 0.0  ;;  %v1419_v62 = vrot.slane %v634_v56, %v1294_v3  ;;  %v1422_v63 = vrot.slane %v850_v57, %v1294_v3  ;;  %v1425_v0 = vrot.slane %v414_v61, %v1294_v3  ;;  %vm631_vm2 = vmand %vm629_vm1, %vm630_vm10 }
  0x21   : > { %v374_v9 = vsel %vm299_vm0, %v1402_v58, 0.0  ;;  %vm454_vm3 = vcmp.eq.s32.totalorder %v1291_v2, %v1412_v59  ;;  %v1432_v10 = vrot.slane %v414_v61, %v1297_v4  ;;  %v632_v13 = vsel %vm631_vm2, %v627_v46, 0.0  ;;  %vm847_vm5 = vmand %vm1385_vm11, %vm628_vm8 }
  0x22   : > { %vm674_vm4 = vcmp.eq.s32.totalorder %v1291_v2, %v1419_v62  ;;  %vm890_vm6 = vcmp.eq.s32.totalorder %v1291_v2, %v1422_v63  ;;  %v1442_v14 = vrot.slane %v634_v56, %v1297_v4  ;;  %v530_v21 = vsel %vm455_vm15, %v1425_v0, 0.0  ;;  %vm848_vm7 = vmand %vm847_vm5, %vm630_vm10 }
  0x23   : > { %v1449_v22 = vrot.slane %v632_v13, %v1294_v3  ;;  %v529_v23 = vsel %vm454_vm3, %v1432_v10, 0.0  ;;  %v1454_v24 = vrot.slane %v632_v13, %v1297_v4  ;;  %v594_v29 = vadd.f32 %v530_v21, %v375_v60 }
  0x24   : > { %v849_v30 = vsel %vm848_vm7, %v1353_v33, 0.0  ;;  %v593_v31 = vadd.f32 %v529_v23, %v374_v9  ;;  %vm673_vm8 = vcmp.eq.s32.totalorder %v1291_v2, %v1442_v14  ;;  %v1465_v39 = vrot.slane %v850_v57, %v1297_v4 }
  0x25   : > { %v749_v32 = vsel %vm674_vm4, %v1449_v22, 0.0  ;;  %v1461_v37 = vrot.slane %v849_v30, %v1294_v3  ;;  %v748_v38 = vsel %vm673_vm8, %v1454_v24, 0.0  ;;  %v1468_v42 = vrot.slane %v849_v30, %v1297_v4 }
  0x26   : > { %v813_v40 = vadd.f32 %v749_v32, %v594_v29  ;;  %v812_v41 = vadd.f32 %v748_v38, %v593_v31  ;;  %vm298_vm9 = vcmp.eq.s32.totalorder %v1306_v5, %v1382_v51  ;;  %vm889_vm10 = vcmp.eq.s32.totalorder %v1291_v2, %v1465_v39 }
  0x27   : > { %v965_v33 = vsel %vm890_vm6, %v1461_v37, 0.0  ;;  %v373_v3 = vsel %vm298_vm9, %v1396_v55, 0.0  ;;  %vm453_vm11 = vcmp.eq.s32.totalorder %v1306_v5, %v1390_v53  ;;  %v964_v4 = vsel %vm889_vm10, %v1468_v42, 0.0 }
  0x28   : > { %v1029_v44 = vadd.f32 %v965_v33, %v813_v40  ;;  %v528_v45 = vsel %vm453_vm11, %v1425_v0, 0.0  ;;  %vm672_vm12 = vcmp.eq.s32.totalorder %v1306_v5, %v1419_v62  ;;  %v1028_v46 = vadd.f32 %v964_v4, %v812_v41 }
  0x29   : > { %v592_v47 = vadd.f32 %v528_v45, %v373_v3  ;;  %v747_v50 = vsel %vm672_vm12, %v1449_v22, 0.0  ;;  %vm888_vm13 = vcmp.eq.s32.totalorder %v1306_v5, %v1422_v63  ;;  %vm297_vm14 = vcmp.eq.s32.totalorder %v1306_v5, %v1393_v54 }
  0x2a   : > { %1066 = vmatprep.subr.mxu0 %v1029_v44  ;;  %v963_v2 = vsel %vm888_vm13, %v1461_v37, 0.0  ;;  %vm452_vm15 = vcmp.eq.s32.totalorder %v1306_v5, %v1412_v59  ;;  %vm671_vm0 = vcmp.eq.s32.totalorder %v1306_v5, %v1442_v14  ;;  %v372_v56 = vsel %vm297_vm14, %v1402_v58, 0.0 }
  0x2b   : > { %1067 = vmatpush1.msra.mxu0 %v1028_v46  ;;  %v811_v52 = vadd.f32 %v747_v50, %v592_v47  ;;  %v527_v57 = vsel %vm452_vm15, %v1432_v10, 0.0  ;;  %v746_v60 = vsel %vm671_vm0, %v1454_v24, 0.0  ;;  %vm887_vm1 = vcmp.eq.s32.totalorder %v1306_v5, %v1465_v39 }
  0x2c   : > { %v591_v61 = vadd.f32 %v527_v57, %v372_v56  ;;  %vm296_vm2 = vcmp.eq.s32.totalorder %v1309_v6, %v1382_v51  ;;  %vm451_vm3 = vcmp.eq.s32.totalorder %v1309_v6, %v1390_v53  ;;  %v962_v13 = vsel %vm887_vm1, %v1468_v42, 0.0 }
  0x2d   : > { %v1027_v9 = vadd.f32 %v963_v2, %v811_v52  ;;  %v371_v21 = vsel %vm296_vm2, %v1396_v55, 0.0  ;;  %v526_v23 = vsel %vm451_vm3, %v1425_v0, 0.0  ;;  %vm670_vm4 = vcmp.eq.s32.totalorder %v1309_v6, %v1419_v62 }
  0x2e   : > { %v810_v29 = vadd.f32 %v746_v60, %v591_v61  ;;  %v590_v30 = vadd.f32 %v526_v23, %v371_v21  ;;  %vm886_vm5 = vcmp.eq.s32.totalorder %v1309_v6, %v1422_v63  ;;  %v745_v5 = vsel %vm670_vm4, %v1449_v22, 0.0 }
  0x2f   : > { %1068 = vmatprep.subr.mxu0 %v1027_v9  ;;  %v961_v31 = vsel %vm886_vm5, %v1461_v37, 0.0  ;;  %vm295_vm6 = vcmp.eq.s32.totalorder %v1309_v6, %v1393_v54  ;;  %vm450_vm7 = vcmp.eq.s32.totalorder %v1309_v6, %v1412_v59  ;;  %vm669_vm8 = vcmp.eq.s32.totalorder %v1309_v6, %v1442_v14 }
  0x30   : > { %v1026_v32 = vadd.f32 %v962_v13, %v810_v29  ;;  %v809_v38 = vadd.f32 %v745_v5, %v590_v30  ;;  %v370_v40 = vsel %vm295_vm6, %v1402_v58, 0.0  ;;  %v525_v41 = vsel %vm450_vm7, %v1432_v10, 0.0 }
  0x31   : > { %v589_v33 = vadd.f32 %v525_v41, %v370_v40  ;;  %vm885_vm9 = vcmp.eq.s32.totalorder %v1309_v6, %v1465_v39  ;;  %vm294_vm10 = vcmp.eq.s32.totalorder %v1312_v7, %v1382_v51  ;;  %v744_v44 = vsel %vm669_vm8, %v1454_v24, 0.0 }
  0x32   : > { %1069 = vmatpush1.msra.mxu0 %v1026_v32  ;;  %v1025_v3 = vadd.f32 %v961_v31, %v809_v38  ;;  %v960_v4 = vsel %vm885_vm9, %v1468_v42, 0.0  ;;  %v369_v45 = vsel %vm294_vm10, %v1396_v55, 0.0  ;;  %vm449_vm11 = vcmp.eq.s32.totalorder %v1312_v7, %v1390_v53 }
  0x33   : > { %v808_v46 = vadd.f32 %v744_v44, %v589_v33  ;;  %vm668_vm12 = vcmp.eq.s32.totalorder %v1312_v7, %v1419_v62  ;;  %vm884_vm13 = vcmp.eq.s32.totalorder %v1312_v7, %v1422_v63  ;;  %v524_v6 = vsel %vm449_vm11, %v1425_v0, 0.0 }
  0x34   : > { %1070 = vmatprep.subr.mxu0 %v1025_v3  ;;  %v743_v47 = vsel %vm668_vm12, %v1449_v22, 0.0  ;;  %v959_v50 = vsel %vm884_vm13, %v1461_v37, 0.0  ;;  %vm293_vm14 = vcmp.eq.s32.totalorder %v1312_v7, %v1393_v54  ;;  %v588_v52 = vadd.f32 %v524_v6, %v369_v45 }
  0x35   : > { %v1024_v2 = vadd.f32 %v960_v4, %v808_v46  ;;  %v368_v56 = vsel %vm293_vm14, %v1402_v58, 0.0  ;;  %vm448_vm15 = vcmp.eq.s32.totalorder %v1312_v7, %v1412_v59  ;;  %vm667_vm0 = vcmp.eq.s32.totalorder %v1312_v7, %v1442_v14 }
  0x36   : > { %v523_v57 = vsel %vm448_vm15, %v1432_v10, 0.0  ;;  %vm883_vm1 = vcmp.eq.s32.totalorder %v1312_v7, %v1465_v39  ;;  %vm292_vm2 = vcmp.eq.s32.totalorder %v1315_v8, %v1382_v51  ;;  %v807_v60 = vadd.f32 %v743_v47, %v588_v52 }
  0x37   : > { %1071 = vmatpush1.msra.mxu0 %v1024_v2  ;;  %v587_v61 = vadd.f32 %v523_v57, %v368_v56  ;;  %v742_v9 = vsel %vm667_vm0, %v1454_v24, 0.0  ;;  %v958_v13 = vsel %vm883_vm1, %v1468_v42, 0.0  ;;  %v367_v21 = vsel %vm292_vm2, %v1396_v55, 0.0 }
  0x38   : > { %vm447_vm3 = vcmp.eq.s32.totalorder %v1315_v8, %v1390_v53  ;;  %vm666_vm4 = vcmp.eq.s32.totalorder %v1315_v8, %v1419_v62  ;;  %vm882_vm5 = vcmp.eq.s32.totalorder %v1315_v8, %v1422_v63  ;;  %v1023_v7 = vadd.f32 %v959_v50, %v807_v60 }
  0x39   : > { %v806_v23 = vadd.f32 %v742_v9, %v587_v61  ;;  %v522_v29 = vsel %vm447_vm3, %v1425_v0, 0.0  ;;  %v741_v30 = vsel %vm666_vm4, %v1449_v22, 0.0  ;;  %v957_v31 = vsel %vm882_vm5, %v1461_v37, 0.0 }
  0x3a   : > { %v586_v5 = vadd.f32 %v522_v29, %v367_v21  ;;  %vm291_vm6 = vcmp.eq.s32.totalorder %v1315_v8, %v1393_v54  ;;  %vm446_vm7 = vcmp.eq.s32.totalorder %v1315_v8, %v1412_v59  ;;  %1072 = vmatprep.subr.mxu0 %v1023_v7  ;;  %vm665_vm8 = vcmp.eq.s32.totalorder %v1315_v8, %v1442_v14 }
  0x3b   : > { %v1022_v32 = vadd.f32 %v958_v13, %v806_v23  ;;  %v366_v38 = vsel %vm291_vm6, %v1402_v58, 0.0  ;;  %v521_v40 = vsel %vm446_vm7, %v1432_v10, 0.0  ;;  %v740_v3 = vsel %vm665_vm8, %v1454_v24, 0.0 }
  0x3c   : > { %v805_v41 = vadd.f32 %v741_v30, %v586_v5  ;;  %v585_v33 = vadd.f32 %v521_v40, %v366_v38  ;;  %vm881_vm9 = vcmp.eq.s32.totalorder %v1315_v8, %v1465_v39  ;;  %vm290_vm10 = vcmp.eq.s32.totalorder %v1318_v11, %v1382_v51 }
  0x3d   : > { %1073 = vmatpush1.msra.mxu0 %v1022_v32  ;;  %v956_v44 = vsel %vm881_vm9, %v1468_v42, 0.0  ;;  %vm445_vm11 = vcmp.eq.s32.totalorder %v1318_v11, %v1390_v53  ;;  %vm664_vm12 = vcmp.eq.s32.totalorder %v1318_v11, %v1419_v62  ;;  %v365_v46 = vsel %vm290_vm10, %v1396_v55, 0.0 }
  0x3e   : > { %v1021_v4 = vadd.f32 %v957_v31, %v805_v41  ;;  %v804_v45 = vadd.f32 %v740_v3, %v585_v33  ;;  %v520_v6 = vsel %vm445_vm11, %v1425_v0, 0.0  ;;  %v739_v8 = vsel %vm664_vm12, %v1449_v22, 0.0 }
  0x3f   : > { %v584_v47 = vadd.f32 %v520_v6, %v365_v46  ;;  %vm880_vm13 = vcmp.eq.s32.totalorder %v1318_v11, %v1422_v63  ;;  %vm289_vm14 = vcmp.eq.s32.totalorder %v1318_v11, %v1393_v54  ;;  %vm444_vm15 = vcmp.eq.s32.totalorder %v1318_v11, %v1412_v59 }
  0x40   : > { %1074 = vmatprep.subr.mxu0 %v1021_v4  ;;  %v1020_v50 = vadd.f32 %v956_v44, %v804_v45  ;;  %v955_v2 = vsel %vm880_vm13, %v1461_v37, 0.0  ;;  %v364_v52 = vsel %vm289_vm14, %v1402_v58, 0.0  ;;  %v519_v57 = vsel %vm444_vm15, %v1432_v10, 0.0 }
  0x41   : > { %v803_v56 = vadd.f32 %v739_v8, %v584_v47  ;;  %vm663_vm0 = vcmp.eq.s32.totalorder %v1318_v11, %v1442_v14  ;;  %vm879_vm1 = vcmp.eq.s32.totalorder %v1318_v11, %v1465_v39  ;;  %v583_v60 = vadd.f32 %v519_v57, %v364_v52 }
  0x42   : > { %1075 = vmatpush1.msra.mxu0 %v1020_v50  ;;  %v738_v61 = vsel %vm663_vm0, %v1454_v24, 0.0  ;;  %v954_v9 = vsel %vm879_vm1, %v1468_v42, 0.0  ;;  %vm288_vm2 = vcmp.eq.s32.totalorder %v1321_v12, %v1382_v51  ;;  %vm443_vm3 = vcmp.eq.s32.totalorder %v1321_v12, %v1390_v53 }
  0x43   : > { %v1019_v13 = vadd.f32 %v955_v2, %v803_v56  ;;  %v363_v21 = vsel %vm288_vm2, %v1396_v55, 0.0  ;;  %vm662_vm4 = vcmp.eq.s32.totalorder %v1321_v12, %v1419_v62  ;;  %v802_v7 = vadd.f32 %v738_v61, %v583_v60 }
  0x44   : > { %v518_v11 = vsel %vm443_vm3, %v1425_v0, 0.0  ;;  %v737_v23 = vsel %vm662_vm4, %v1449_v22, 0.0  ;;  %vm878_vm5 = vcmp.eq.s32.totalorder %v1321_v12, %v1422_v63  ;;  %vm287_vm6 = vcmp.eq.s32.totalorder %v1321_v12, %v1393_v54 }
  0x45   : > { %1076 = vmatprep.subr.mxu0 %v1019_v13  ;;  %v582_v29 = vadd.f32 %v518_v11, %v363_v21  ;;  %v953_v30 = vsel %vm878_vm5, %v1461_v37, 0.0  ;;  %vm442_vm7 = vcmp.eq.s32.totalorder %v1321_v12, %v1412_v59  ;;  %v1018_v5 = vadd.f32 %v954_v9, %v802_v7 }
  0x46   : > { %v362_v31 = vsel %vm287_vm6, %v1402_v58, 0.0  ;;  %v517_v32 = vsel %vm442_vm7, %v1432_v10, 0.0  ;;  %vm661_vm8 = vcmp.eq.s32.totalorder %v1321_v12, %v1442_v14  ;;  %vm877_vm9 = vcmp.eq.s32.totalorder %v1321_v12, %v1465_v39 }
  0x47   : > { %v801_v38 = vadd.f32 %v737_v23, %v582_v29  ;;  %v581_v40 = vadd.f32 %v517_v32, %v362_v31  ;;  %v736_v41 = vsel %vm661_vm8, %v1454_v24, 0.0  ;;  %1077 = vmatpush1.msra.mxu0 %v1018_v5  ;;  %v952_v33 = vsel %vm877_vm9, %v1468_v42, 0.0 }
  0x48   : > { %vm286_vm10 = vcmp.eq.s32.totalorder %v1324_v15, %v1382_v51  ;;  %vm441_vm11 = vcmp.eq.s32.totalorder %v1324_v15, %v1390_v53  ;;  %vm660_vm12 = vcmp.eq.s32.totalorder %v1324_v15, %v1419_v62  ;;  %vm876_vm13 = vcmp.eq.s32.totalorder %v1324_v15, %v1422_v63 }
  0x49   : > { %v1017_v3 = vadd.f32 %v953_v30, %v801_v38  ;;  %v800_v44 = vadd.f32 %v736_v41, %v581_v40  ;;  %v361_v4 = vsel %vm286_vm10, %v1396_v55, 0.0  ;;  %v516_v45 = vsel %vm441_vm11, %v1425_v0, 0.0 }
  0x4a   : > { %v580_v46 = vadd.f32 %v516_v45, %v361_v4  ;;  %v735_v12 = vsel %vm660_vm12, %v1449_v22, 0.0  ;;  %vm285_vm14 = vcmp.eq.s32.totalorder %v1324_v15, %v1393_v54  ;;  %v951_v47 = vsel %vm876_vm13, %v1461_v37, 0.0 }
  0x4b   : > { %1078 = vmatprep.subr.mxu0 %v1017_v3  ;;  %v1016_v6 = vadd.f32 %v952_v33, %v800_v44  ;;  %v360_v8 = vsel %vm285_vm14, %v1402_v58, 0.0  ;;  %vm440_vm15 = vcmp.eq.s32.totalorder %v1324_v15, %v1412_v59  ;;  %vm659_vm0 = vcmp.eq.s32.totalorder %v1324_v15, %v1442_v14 }
  0x4c   : > { %v799_v50 = vadd.f32 %v735_v12, %v580_v46  ;;  %v515_v2 = vsel %vm440_vm15, %v1432_v10, 0.0  ;;  %vm875_vm1 = vcmp.eq.s32.totalorder %v1324_v15, %v1465_v39  ;;  %v734_v56 = vsel %vm659_vm0, %v1454_v24, 0.0 }
  0x4d   : > { %1079 = vmatpush1.msra.mxu0 %v1016_v6  ;;  %v579_v52 = vadd.f32 %v515_v2, %v360_v8  ;;  %v950_v57 = vsel %vm875_vm1, %v1468_v42, 0.0  ;;  %vm284_vm2 = vcmp.eq.s32.totalorder %v1327_v16, %v1382_v51  ;;  %vm439_vm3 = vcmp.eq.s32.totalorder %v1327_v16, %v1390_v53 }
  0x4e   : > { %v1015_v60 = vadd.f32 %v951_v47, %v799_v50  ;;  %v359_v61 = vsel %vm284_vm2, %v1396_v55, 0.0  ;;  %vm658_vm4 = vcmp.eq.s32.totalorder %v1327_v16, %v1419_v62  ;;  %v514_v15 = vsel %vm439_vm3, %v1425_v0, 0.0 }
  0x4f   : > { %v798_v9 = vadd.f32 %v734_v56, %v579_v52  ;;  %v733_v13 = vsel %vm658_vm4, %v1449_v22, 0.0  ;;  %vm874_vm5 = vcmp.eq.s32.totalorder %v1327_v16, %v1422_v63  ;;  %v578_v21 = vadd.f32 %v514_v15, %v359_v61 }
  0x50   : > { %1080 = vmatprep.subr.mxu0 %v1015_v60  ;;  %v949_v7 = vsel %vm874_vm5, %v1461_v37, 0.0  ;;  %vm283_vm6 = vcmp.eq.s32.totalorder %v1327_v16, %v1393_v54  ;;  %vm438_vm7 = vcmp.eq.s32.totalorder %v1327_v16, %v1412_v59  ;;  %vm657_vm8 = vcmp.eq.s32.totalorder %v1327_v16, %v1442_v14 }
  0x51   : > { %v1014_v11 = vadd.f32 %v950_v57, %v798_v9  ;;  %v358_v23 = vsel %vm283_vm6, %v1402_v58, 0.0  ;;  %v513_v29 = vsel %vm438_vm7, %v1432_v10, 0.0  ;;  %v797_v30 = vadd.f32 %v733_v13, %v578_v21 }
  0x52   : > { %v577_v5 = vadd.f32 %v513_v29, %v358_v23  ;;  %v732_v31 = vsel %vm657_vm8, %v1454_v24, 0.0  ;;  %vm873_vm9 = vcmp.eq.s32.totalorder %v1327_v16, %v1465_v39  ;;  %vm282_vm10 = vcmp.eq.s32.totalorder %v1330_v17, %v1382_v51 }
  0x53   : > { %1081 = vmatpush1.msra.mxu0 %v1014_v11  ;;  %v948_v32 = vsel %vm873_vm9, %v1468_v42, 0.0  ;;  %vm437_vm11 = vcmp.eq.s32.totalorder %v1330_v17, %v1390_v53  ;;  %vm656_vm12 = vcmp.eq.s32.totalorder %v1330_v17, %v1419_v62  ;;  %v1013_v38 = vadd.f32 %v949_v7, %v797_v30 }
  0x54   : > { %v796_v40 = vadd.f32 %v732_v31, %v577_v5  ;;  %v357_v41 = vsel %vm282_vm10, %v1396_v55, 0.0  ;;  %v512_v33 = vsel %vm437_vm11, %v1425_v0, 0.0  ;;  %v731_v16 = vsel %vm656_vm12, %v1449_v22, 0.0 }
  0x55   : > { %v576_v3 = vadd.f32 %v512_v33, %v357_v41  ;;  %vm872_vm13 = vcmp.eq.s32.totalorder %v1330_v17, %v1422_v63  ;;  %vm281_vm14 = vcmp.eq.s32.totalorder %v1330_v17, %v1393_v54  ;;  %1082 = vmatprep.subr.mxu0 %v1013_v38  ;;  %vm436_vm15 = vcmp.eq.s32.totalorder %v1330_v17, %v1412_v59 }
  0x56   : > { %v1012_v44 = vadd.f32 %v948_v32, %v796_v40  ;;  %v947_v4 = vsel %vm872_vm13, %v1461_v37, 0.0  ;;  %v356_v45 = vsel %vm281_vm14, %v1402_v58, 0.0  ;;  %v511_v12 = vsel %vm436_vm15, %v1432_v10, 0.0 }
  0x57   : > { %v795_v46 = vadd.f32 %v731_v16, %v576_v3  ;;  %vm655_vm0 = vcmp.eq.s32.totalorder %v1330_v17, %v1442_v14  ;;  %vm871_vm1 = vcmp.eq.s32.totalorder %v1330_v17, %v1465_v39  ;;  %v575_v6 = vadd.f32 %v511_v12, %v356_v45 }
  0x58   : > { %1083 = vmatpush1.msra.mxu0 %v1012_v44  ;;  %v730_v47 = vsel %vm655_vm0, %v1454_v24, 0.0  ;;  %v946_v8 = vsel %vm871_vm1, %v1468_v42, 0.0  ;;  %vm280_vm2 = vcmp.eq.s32.totalorder %v1333_v18, %v1382_v51  ;;  %vm435_vm3 = vcmp.eq.s32.totalorder %v1333_v18, %v1390_v53 }
  0x59   : > { %v1011_v50 = vadd.f32 %v947_v4, %v795_v46  ;;  %v355_v2 = vsel %vm280_vm2, %v1396_v55, 0.0  ;;  %vm654_vm4 = vcmp.eq.s32.totalorder %v1333_v18, %v1419_v62  ;;  %v794_v52 = vadd.f32 %v730_v47, %v575_v6 }
  0x5a   : > { %v510_v17 = vsel %vm435_vm3, %v1425_v0, 0.0  ;;  %v729_v56 = vsel %vm654_vm4, %v1449_v22, 0.0  ;;  %vm870_vm5 = vcmp.eq.s32.totalorder %v1333_v18, %v1422_v63  ;;  %vm279_vm6 = vcmp.eq.s32.totalorder %v1333_v18, %v1393_v54 }
  0x5b   : > { %1084 = vmatprep.subr.mxu0 %v1011_v50  ;;  %v574_v57 = vadd.f32 %v510_v17, %v355_v2  ;;  %v945_v60 = vsel %vm870_vm5, %v1461_v37, 0.0  ;;  %vm434_vm7 = vcmp.eq.s32.totalorder %v1333_v18, %v1412_v59  ;;  %v1010_v61 = vadd.f32 %v946_v8, %v794_v52 }
  0x5c   : > { %v354_v9 = vsel %vm279_vm6, %v1402_v58, 0.0  ;;  %v509_v15 = vsel %vm434_vm7, %v1432_v10, 0.0  ;;  %vm653_vm8 = vcmp.eq.s32.totalorder %v1333_v18, %v1442_v14  ;;  %vm869_vm9 = vcmp.eq.s32.totalorder %v1333_v18, %v1465_v39 }
  0x5d   : > { %v793_v13 = vadd.f32 %v729_v56, %v574_v57  ;;  %v573_v21 = vadd.f32 %v509_v15, %v354_v9  ;;  %v728_v7 = vsel %vm653_vm8, %v1454_v24, 0.0  ;;  %1085 = vmatpush1.msra.mxu0 %v1010_v61  ;;  %v944_v11 = vsel %vm869_vm9, %v1468_v42, 0.0 }
  0x5e   : > { %vm278_vm10 = vcmp.eq.s32.totalorder %v1336_v19, %v1382_v51  ;;  %vm433_vm11 = vcmp.eq.s32.totalorder %v1336_v19, %v1390_v53  ;;  %vm652_vm12 = vcmp.eq.s32.totalorder %v1336_v19, %v1419_v62  ;;  %vm868_vm13 = vcmp.eq.s32.totalorder %v1336_v19, %v1422_v63 }
  0x5f   : > { %v1009_v23 = vadd.f32 %v945_v60, %v793_v13  ;;  %v792_v29 = vadd.f32 %v728_v7, %v573_v21  ;;  %v353_v30 = vsel %vm278_vm10, %v1396_v55, 0.0  ;;  %v508_v5 = vsel %vm433_vm11, %v1425_v0, 0.0 }
  0x60   : > { %v572_v31 = vadd.f32 %v508_v5, %v353_v30  ;;  %v727_v18 = vsel %vm652_vm12, %v1449_v22, 0.0  ;;  %vm277_vm14 = vcmp.eq.s32.totalorder %v1336_v19, %v1393_v54  ;;  %v943_v38 = vsel %vm868_vm13, %v1461_v37, 0.0 }
  0x61   : > { %1086 = vmatprep.subr.mxu0 %v1009_v23  ;;  %v1008_v32 = vadd.f32 %v944_v11, %v792_v29  ;;  %v352_v40 = vsel %vm277_vm14, %v1402_v58, 0.0  ;;  %vm432_vm15 = vcmp.eq.s32.totalorder %v1336_v19, %v1412_v59  ;;  %vm651_vm0 = vcmp.eq.s32.totalorder %v1336_v19, %v1442_v14 }
  0x62   : > { %v791_v41 = vadd.f32 %v727_v18, %v572_v31  ;;  %v507_v33 = vsel %vm432_vm15, %v1432_v10, 0.0  ;;  %vm867_vm1 = vcmp.eq.s32.totalorder %v1336_v19, %v1465_v39  ;;  %v726_v16 = vsel %vm651_vm0, %v1454_v24, 0.0 }
  0x63   : > { %1087 = vmatpush1.msra.mxu0 %v1008_v32  ;;  %v571_v3 = vadd.f32 %v507_v33, %v352_v40  ;;  %v942_v44 = vsel %vm867_vm1, %v1468_v42, 0.0  ;;  %vm276_vm2 = vcmp.eq.s32.totalorder %v1339_v20, %v1382_v51  ;;  %vm431_vm3 = vcmp.eq.s32.totalorder %v1339_v20, %v1390_v53 }
  0x64   : > { %v1007_v4 = vadd.f32 %v943_v38, %v791_v41  ;;  %v351_v45 = vsel %vm276_vm2, %v1396_v55, 0.0  ;;  %vm650_vm4 = vcmp.eq.s32.totalorder %v1339_v20, %v1419_v62  ;;  %v506_v19 = vsel %vm431_vm3, %v1425_v0, 0.0 }
  0x65   : > { %v790_v46 = vadd.f32 %v726_v16, %v571_v3  ;;  %v725_v12 = vsel %vm650_vm4, %v1449_v22, 0.0  ;;  %vm866_vm5 = vcmp.eq.s32.totalorder %v1339_v20, %v1422_v63  ;;  %v570_v6 = vadd.f32 %v506_v19, %v351_v45 }
  0x66   : > { %1088 = vmatprep.subr.mxu0 %v1007_v4  ;;  %v941_v47 = vsel %vm866_vm5, %v1461_v37, 0.0  ;;  %vm275_vm6 = vcmp.eq.s32.totalorder %v1339_v20, %v1393_v54  ;;  %vm430_vm7 = vcmp.eq.s32.totalorder %v1339_v20, %v1412_v59  ;;  %vm649_vm8 = vcmp.eq.s32.totalorder %v1339_v20, %v1442_v14 }
  0x67   : > { %v1006_v8 = vadd.f32 %v942_v44, %v790_v46  ;;  %v350_v50 = vsel %vm275_vm6, %v1402_v58, 0.0  ;;  %v505_v2 = vsel %vm430_vm7, %v1432_v10, 0.0  ;;  %v789_v52 = vadd.f32 %v725_v12, %v570_v6 }
  0x68   : > { %v569_v17 = vadd.f32 %v505_v2, %v350_v50  ;;  %v724_v56 = vsel %vm649_vm8, %v1454_v24, 0.0  ;;  %vm865_vm9 = vcmp.eq.s32.totalorder %v1339_v20, %v1465_v39  ;;  %vm274_vm10 = vcmp.eq.s32.totalorder %v1342_v25, %v1382_v51 }
  0x69   : > { %1089 = vmatpush1.msra.mxu0 %v1006_v8  ;;  %v940_v57 = vsel %vm865_vm9, %v1468_v42, 0.0  ;;  %vm429_vm11 = vcmp.eq.s32.totalorder %v1342_v25, %v1390_v53  ;;  %vm648_vm12 = vcmp.eq.s32.totalorder %v1342_v25, %v1419_v62  ;;  %v1005_v60 = vadd.f32 %v941_v47, %v789_v52 }
  0x6a   : > { %v788_v61 = vadd.f32 %v724_v56, %v569_v17  ;;  %v349_v9 = vsel %vm274_vm10, %v1396_v55, 0.0  ;;  %v504_v15 = vsel %vm429_vm11, %v1425_v0, 0.0  ;;  %v723_v20 = vsel %vm648_vm12, %v1449_v22, 0.0 }
  0x6b   : > { %v568_v13 = vadd.f32 %v504_v15, %v349_v9  ;;  %vm864_vm13 = vcmp.eq.s32.totalorder %v1342_v25, %v1422_v63  ;;  %vm273_vm14 = vcmp.eq.s32.totalorder %v1342_v25, %v1393_v54  ;;  %1090 = vmatprep.subr.mxu0 %v1005_v60  ;;  %vm428_vm15 = vcmp.eq.s32.totalorder %v1342_v25, %v1412_v59 }
  0x6c   : > { %v1004_v21 = vadd.f32 %v940_v57, %v788_v61  ;;  %v939_v7 = vsel %vm864_vm13, %v1461_v37, 0.0  ;;  %v348_v11 = vsel %vm273_vm14, %v1402_v58, 0.0  ;;  %v503_v29 = vsel %vm428_vm15, %v1432_v10, 0.0 }
  0x6d   : > { %v787_v23 = vadd.f32 %v723_v20, %v568_v13  ;;  %vm647_vm0 = vcmp.eq.s32.totalorder %v1342_v25, %v1442_v14  ;;  %vm863_vm1 = vcmp.eq.s32.totalorder %v1342_v25, %v1465_v39  ;;  %v567_v30 = vadd.f32 %v503_v29, %v348_v11 }
  0x6e   : > { %1091 = vmatpush1.msra.mxu0 %v1004_v21  ;;  %v722_v5 = vsel %vm647_vm0, %v1454_v24, 0.0  ;;  %v938_v31 = vsel %vm863_vm1, %v1468_v42, 0.0  ;;  %vm272_vm2 = vcmp.eq.s32.totalorder %v1345_v26, %v1382_v51  ;;  %vm427_vm3 = vcmp.eq.s32.totalorder %v1345_v26, %v1390_v53 }
  0x6f   : > { %v1003_v18 = vadd.f32 %v939_v7, %v787_v23  ;;  %v347_v32 = vsel %vm272_vm2, %v1396_v55, 0.0  ;;  %vm646_vm4 = vcmp.eq.s32.totalorder %v1345_v26, %v1419_v62  ;;  %v786_v38 = vadd.f32 %v722_v5, %v567_v30 }
  0x70   : > { %v502_v25 = vsel %vm427_vm3, %v1425_v0, 0.0  ;;  %v721_v40 = vsel %vm646_vm4, %v1449_v22, 0.0  ;;  %vm862_vm5 = vcmp.eq.s32.totalorder %v1345_v26, %v1422_v63  ;;  %vm271_vm6 = vcmp.eq.s32.totalorder %v1345_v26, %v1393_v54 }
  0x71   : > { %1092 = vmatprep.subr.mxu0 %v1003_v18  ;;  %v566_v41 = vadd.f32 %v502_v25, %v347_v32  ;;  %v937_v33 = vsel %vm862_vm5, %v1461_v37, 0.0  ;;  %vm426_vm7 = vcmp.eq.s32.totalorder %v1345_v26, %v1412_v59  ;;  %v1002_v3 = vadd.f32 %v938_v31, %v786_v38 }
  0x72   : > { %v346_v16 = vsel %vm271_vm6, %v1402_v58, 0.0  ;;  %v501_v44 = vsel %vm426_vm7, %v1432_v10, 0.0  ;;  %vm645_vm8 = vcmp.eq.s32.totalorder %v1345_v26, %v1442_v14  ;;  %vm861_vm9 = vcmp.eq.s32.totalorder %v1345_v26, %v1465_v39 }
  0x73   : > { %v785_v4 = vadd.f32 %v721_v40, %v566_v41  ;;  %v565_v45 = vadd.f32 %v501_v44, %v346_v16  ;;  %v720_v46 = vsel %vm645_vm8, %v1454_v24, 0.0  ;;  %1093 = vmatpush1.msra.mxu0 %v1002_v3  ;;  %v936_v19 = vsel %vm861_vm9, %v1468_v42, 0.0 }
  0x74   : > { %vm270_vm10 = vcmp.eq.s32.totalorder %v1287_v1, %v1382_v51  ;;  %vm425_vm11 = vcmp.eq.s32.totalorder %v1287_v1, %v1390_v53  ;;  %vm644_vm12 = vcmp.eq.s32.totalorder %v1287_v1, %v1419_v62  ;;  %vm860_vm13 = vcmp.eq.s32.totalorder %v1287_v1, %v1422_v63 }
  0x75   : > { %v1001_v12 = vadd.f32 %v937_v33, %v785_v4  ;;  %v784_v6 = vadd.f32 %v720_v46, %v565_v45  ;;  %v345_v47 = vsel %vm270_vm10, %v1396_v55, 0.0  ;;  %v500_v8 = vsel %vm425_vm11, %v1425_v0, 0.0 }
  0x76   : > { %v564_v50 = vadd.f32 %v500_v8, %v345_v47  ;;  %v719_v26 = vsel %vm644_vm12, %v1449_v22, 0.0  ;;  %vm269_vm14 = vcmp.eq.s32.totalorder %v1287_v1, %v1393_v54  ;;  %v935_v52 = vsel %vm860_vm13, %v1461_v37, 0.0 }
  0x77   : > { %1094 = vmatprep.subr.mxu0 %v1001_v12  ;;  %v1000_v2 = vadd.f32 %v936_v19, %v784_v6  ;;  %v344_v17 = vsel %vm269_vm14, %v1402_v58, 0.0  ;;  %vm424_vm15 = vcmp.eq.s32.totalorder %v1287_v1, %v1412_v59  ;;  %vm643_vm0 = vcmp.eq.s32.totalorder %v1287_v1, %v1442_v14 }
  0x78   : > { %v783_v56 = vadd.f32 %v719_v26, %v564_v50  ;;  %v499_v57 = vsel %vm424_vm15, %v1432_v10, 0.0  ;;  %vm859_vm1 = vcmp.eq.s32.totalorder %v1287_v1, %v1465_v39  ;;  %v718_v61 = vsel %vm643_vm0, %v1454_v24, 0.0 }
  0x79   : > { %1095 = vmatpush1.msra.mxu0 %v1000_v2  ;;  %v563_v60 = vadd.f32 %v499_v57, %v344_v17  ;;  %v934_v9 = vsel %vm859_vm1, %v1468_v42, 0.0  ;;  %vm332_vm2 = vcmp.eq.s32.totalorder %v1348_v27, %v1382_v51  ;;  %vm487_vm3 = vcmp.eq.s32.totalorder %v1348_v27, %v1390_v53 }
  0x7a   : > { %v999_v15 = vadd.f32 %v935_v52, %v783_v56  ;;  %v407_v13 = vsel %vm332_vm2, %v1396_v55, 0.0  ;;  %vm706_vm4 = vcmp.eq.s32.totalorder %v1348_v27, %v1419_v62  ;;  %v562_v21 = vsel %vm487_vm3, %v1425_v0, 0.0 }
  0x7b   : > { %v782_v20 = vadd.f32 %v718_v61, %v563_v60  ;;  %v781_v7 = vsel %vm706_vm4, %v1449_v22, 0.0  ;;  %vm922_vm5 = vcmp.eq.s32.totalorder %v1348_v27, %v1422_v63  ;;  %v626_v11 = vadd.f32 %v562_v21, %v407_v13 }
  0x7c   : > { %1096 = vmatprep.subr.mxu0 %v999_v15  ;;  %v997_v23 = vsel %vm922_vm5, %v1461_v37, 0.0  ;;  %vm331_vm6 = vcmp.eq.s32.totalorder %v1348_v27, %v1393_v54  ;;  %vm486_vm7 = vcmp.eq.s32.totalorder %v1348_v27, %v1412_v59  ;;  %vm705_vm8 = vcmp.eq.s32.totalorder %v1348_v27, %v1442_v14 }
  0x7d   : > { %v998_v29 = vadd.f32 %v934_v9, %v782_v20  ;;  %v406_v30 = vsel %vm331_vm6, %v1402_v58, 0.0  ;;  %v561_v5 = vsel %vm486_vm7, %v1432_v10, 0.0  ;;  %v845_v31 = vadd.f32 %v781_v7, %v626_v11 }
  0x7e   : > { %v625_v18 = vadd.f32 %v561_v5, %v406_v30  ;;  %v780_v32 = vsel %vm705_vm8, %v1454_v24, 0.0  ;;  %vm921_vm9 = vcmp.eq.s32.totalorder %v1348_v27, %v1465_v39  ;;  %vm330_vm10 = vcmp.eq.s32.totalorder %v1351_v28, %v1382_v51 }
  0x7f   : > { %1097 = vmatpush1.msra.mxu0 %v998_v29  ;;  %v996_v38 = vsel %vm921_vm9, %v1468_v42, 0.0  ;;  %vm485_vm11 = vcmp.eq.s32.totalorder %v1351_v28, %v1390_v53  ;;  %vm704_vm12 = vcmp.eq.s32.totalorder %v1351_v28, %v1419_v62  ;;  %v1061_v25 = vadd.f32 %v997_v23, %v845_v31 }
  0x80   : > { %v844_v40 = vadd.f32 %v780_v32, %v625_v18  ;;  %v405_v41 = vsel %vm330_vm10, %v1396_v55, 0.0  ;;  %v560_v33 = vsel %vm485_vm11, %v1425_v0, 0.0  ;;  %v779_v27 = vsel %vm704_vm12, %v1449_v22, 0.0 }
  0x81   : > { %v624_v3 = vadd.f32 %v560_v33, %v405_v41  ;;  %vm920_vm13 = vcmp.eq.s32.totalorder %v1351_v28, %v1422_v63  ;;  %vm329_vm14 = vcmp.eq.s32.totalorder %v1351_v28, %v1393_v54  ;;  %1098 = vmatprep.subr.mxu0 %v1061_v25  ;;  %vm484_vm15 = vcmp.eq.s32.totalorder %v1351_v28, %v1412_v59 }
  0x82   : > { %v1060_v16 = vadd.f32 %v996_v38, %v844_v40  ;;  %v995_v44 = vsel %vm920_vm13, %v1461_v37, 0.0  ;;  %v404_v4 = vsel %vm329_vm14, %v1402_v58, 0.0  ;;  %v559_v46 = vsel %vm484_vm15, %v1432_v10, 0.0 }
  0x83   : > { %v843_v45 = vadd.f32 %v779_v27, %v624_v3  ;;  %vm703_vm0 = vcmp.eq.s32.totalorder %v1351_v28, %v1442_v14  ;;  %vm919_vm1 = vcmp.eq.s32.totalorder %v1351_v28, %v1465_v39  ;;  %v623_v19 = vadd.f32 %v559_v46, %v404_v4 }
  0x84   : > { %1099 = vmatpush2.msra.mxu0 %v1060_v16  ;;  %v778_v12 = vsel %vm703_vm0, %v1454_v24, 0.0  ;;  %v994_v6 = vsel %vm919_vm1, %v1468_v42, 0.0  ;;  %vm328_vm2 = vcmp.eq.s32.totalorder %v1356_v34, %v1382_v51  ;;  %vm483_vm3 = vcmp.eq.s32.totalorder %v1356_v34, %v1390_v53 }
  0x85   : > { %v1059_v47 = vadd.f32 %v995_v44, %v843_v45  ;;  %v403_v8 = vsel %vm328_vm2, %v1396_v55, 0.0  ;;  %vm702_vm4 = vcmp.eq.s32.totalorder %v1356_v34, %v1419_v62  ;;  %v842_v50 = vadd.f32 %v778_v12, %v623_v19 }
  0x86   : > { %v558_v28 = vsel %vm483_vm3, %v1425_v0, 0.0  ;;  %v777_v26 = vsel %vm702_vm4, %v1449_v22, 0.0  ;;  %vm918_vm5 = vcmp.eq.s32.totalorder %v1356_v34, %v1422_v63  ;;  %vm327_vm6 = vcmp.eq.s32.totalorder %v1356_v34, %v1393_v54 }
  0x87   : > { %1100 = vmatprep.subr.mxu0 %v1059_v47  ;;  %v622_v2 = vadd.f32 %v558_v28, %v403_v8  ;;  %v993_v52 = vsel %vm918_vm5, %v1461_v37, 0.0  ;;  %vm482_vm7 = vcmp.eq.s32.totalorder %v1356_v34, %v1412_v59  ;;  %v1058_v17 = vadd.f32 %v994_v6, %v842_v50 }
  0x88   : > { %v402_v56 = vsel %vm327_vm6, %v1402_v58, 0.0  ;;  %v557_v57 = vsel %vm482_vm7, %v1432_v10, 0.0  ;;  %vm701_vm8 = vcmp.eq.s32.totalorder %v1356_v34, %v1442_v14  ;;  %vm917_vm9 = vcmp.eq.s32.totalorder %v1356_v34, %v1465_v39 }
  0x89   : > { %v841_v60 = vadd.f32 %v777_v26, %v622_v2  ;;  %v621_v61 = vadd.f32 %v557_v57, %v402_v56  ;;  %v776_v9 = vsel %vm701_vm8, %v1454_v24, 0.0  ;;  %1101 = vmatpush2.msra.mxu0 %v1058_v17  ;;  %v992_v15 = vsel %vm917_vm9, %v1468_v42, 0.0 }
  0x8a   : > { %vm326_vm10 = vcmp.eq.s32.totalorder %v1359_v35, %v1382_v51  ;;  %vm481_vm11 = vcmp.eq.s32.totalorder %v1359_v35, %v1390_v53  ;;  %vm700_vm12 = vcmp.eq.s32.totalorder %v1359_v35, %v1419_v62  ;;  %vm916_vm13 = vcmp.eq.s32.totalorder %v1359_v35, %v1422_v63 }
  0x8b   : > { %v1057_v13 = vadd.f32 %v993_v52, %v841_v60  ;;  %v840_v20 = vadd.f32 %v776_v9, %v621_v61  ;;  %v401_v21 = vsel %vm326_vm10, %v1396_v55, 0.0  ;;  %v556_v7 = vsel %vm481_vm11, %v1425_v0, 0.0 }
  0x8c   : > { %v620_v11 = vadd.f32 %v556_v7, %v401_v21  ;;  %v775_v34 = vsel %vm700_vm12, %v1449_v22, 0.0  ;;  %vm325_vm14 = vcmp.eq.s32.totalorder %v1359_v35, %v1393_v54  ;;  %v991_v29 = vsel %vm916_vm13, %v1461_v37, 0.0 }
  0x8d   : > { %1102 = vmatprep.subr.mxu0 %v1057_v13  ;;  %v1056_v23 = vadd.f32 %v992_v15, %v840_v20  ;;  %v400_v30 = vsel %vm325_vm14, %v1402_v58, 0.0  ;;  %vm480_vm15 = vcmp.eq.s32.totalorder %v1359_v35, %v1412_v59  ;;  %vm699_vm0 = vcmp.eq.s32.totalorder %v1359_v35, %v1442_v14 }
  0x8e   : > { %v839_v5 = vadd.f32 %v775_v34, %v620_v11  ;;  %v555_v31 = vsel %vm480_vm15, %v1432_v10, 0.0  ;;  %vm915_vm1 = vcmp.eq.s32.totalorder %v1359_v35, %v1465_v39  ;;  %v774_v32 = vsel %vm699_vm0, %v1454_v24, 0.0 }
  0x8f   : > { %1103 = vmatpush2.msra.mxu0 %v1056_v23  ;;  %v619_v18 = vadd.f32 %v555_v31, %v400_v30  ;;  %v990_v38 = vsel %vm915_vm1, %v1468_v42, 0.0  ;;  %vm324_vm2 = vcmp.eq.s32.totalorder %v1362_v36, %v1382_v51  ;;  %vm479_vm3 = vcmp.eq.s32.totalorder %v1362_v36, %v1390_v53 }
  0x90   : > { %v1055_v25 = vadd.f32 %v991_v29, %v839_v5  ;;  %v399_v40 = vsel %vm324_vm2, %v1396_v55, 0.0  ;;  %vm698_vm4 = vcmp.eq.s32.totalorder %v1362_v36, %v1419_v62  ;;  %v554_v35 = vsel %vm479_vm3, %v1425_v0, 0.0 }
  0x91   : > { %v838_v41 = vadd.f32 %v774_v32, %v619_v18  ;;  %v773_v33 = vsel %vm698_vm4, %v1449_v22, 0.0  ;;  %vm914_vm5 = vcmp.eq.s32.totalorder %v1362_v36, %v1422_v63  ;;  %v618_v3 = vadd.f32 %v554_v35, %v399_v40 }
  0x92   : > { %1104 = vmatprep.subr.mxu0 %v1055_v25  ;;  %v989_v27 = vsel %vm914_vm5, %v1461_v37, 0.0  ;;  %vm323_vm6 = vcmp.eq.s32.totalorder %v1362_v36, %v1393_v54  ;;  %vm478_vm7 = vcmp.eq.s32.totalorder %v1362_v36, %v1412_v59  ;;  %vm697_vm8 = vcmp.eq.s32.totalorder %v1362_v36, %v1442_v14 }
  0x93   : > { %v1054_v16 = vadd.f32 %v990_v38, %v838_v41  ;;  %v398_v44 = vsel %vm323_vm6, %v1402_v58, 0.0  ;;  %v553_v4 = vsel %vm478_vm7, %v1432_v10, 0.0  ;;  %v837_v45 = vadd.f32 %v773_v33, %v618_v3 }
  0x94   : > { %v617_v46 = vadd.f32 %v553_v4, %v398_v44  ;;  %v772_v19 = vsel %vm697_vm8, %v1454_v24, 0.0  ;;  %vm913_vm9 = vcmp.eq.s32.totalorder %v1362_v36, %v1465_v39  ;;  %vm322_vm10 = vcmp.eq.s32.totalorder %v1369_v43, %v1382_v51 }
  0x95   : > { %1105 = vmatpush2.msra.mxu0 %v1054_v16  ;;  %v988_v12 = vsel %vm913_vm9, %v1468_v42, 0.0  ;;  %vm477_vm11 = vcmp.eq.s32.totalorder %v1369_v43, %v1390_v53  ;;  %vm696_vm12 = vcmp.eq.s32.totalorder %v1369_v43, %v1419_v62  ;;  %v1053_v6 = vadd.f32 %v989_v27, %v837_v45 }
  0x96   : > { %v836_v47 = vadd.f32 %v772_v19, %v617_v46  ;;  %v397_v8 = vsel %vm322_vm10, %v1396_v55, 0.0  ;;  %v552_v50 = vsel %vm477_vm11, %v1425_v0, 0.0  ;;  %v771_v36 = vsel %vm696_vm12, %v1449_v22, 0.0 }
  0x97   : > { %v616_v28 = vadd.f32 %v552_v50, %v397_v8  ;;  %vm912_vm13 = vcmp.eq.s32.totalorder %v1369_v43, %v1422_v63  ;;  %vm321_vm14 = vcmp.eq.s32.totalorder %v1369_v43, %v1393_v54  ;;  %1106 = vmatprep.subr.mxu0 %v1053_v6  ;;  %vm476_vm15 = vcmp.eq.s32.totalorder %v1369_v43, %v1412_v59 }
  0x98   : > { %v1052_v26 = vadd.f32 %v988_v12, %v836_v47  ;;  %v987_v2 = vsel %vm912_vm13, %v1461_v37, 0.0  ;;  %v396_v52 = vsel %vm321_vm14, %v1402_v58, 0.0  ;;  %v551_v56 = vsel %vm476_vm15, %v1432_v10, 0.0 }
  0x99   : > { %v835_v17 = vadd.f32 %v771_v36, %v616_v28  ;;  %vm695_vm0 = vcmp.eq.s32.totalorder %v1369_v43, %v1442_v14  ;;  %vm911_vm1 = vcmp.eq.s32.totalorder %v1369_v43, %v1465_v39  ;;  %v615_v57 = vadd.f32 %v551_v56, %v396_v52 }
  0x9a   : > { %1107 = vmatpush2.msra.mxu0 %v1052_v26  ;;  %v770_v60 = vsel %vm695_vm0, %v1454_v24, 0.0  ;;  %v986_v61 = vsel %vm911_vm1, %v1468_v42, 0.0  ;;  %vm320_vm2 = vcmp.eq.s32.totalorder %v1376_v48, %v1382_v51  ;;  %vm475_vm3 = vcmp.eq.s32.totalorder %v1376_v48, %v1390_v53 }
  0x9b   : > { %v1051_v9 = vadd.f32 %v987_v2, %v835_v17  ;;  %v395_v15 = vsel %vm320_vm2, %v1396_v55, 0.0  ;;  %vm694_vm4 = vcmp.eq.s32.totalorder %v1376_v48, %v1419_v62  ;;  %v834_v13 = vadd.f32 %v770_v60, %v615_v57 }
  0x9c   : > { %v550_v43 = vsel %vm475_vm3, %v1425_v0, 0.0  ;;  %v769_v20 = vsel %vm694_vm4, %v1449_v22, 0.0  ;;  %vm910_vm5 = vcmp.eq.s32.totalorder %v1376_v48, %v1422_v63  ;;  %vm319_vm6 = vcmp.eq.s32.totalorder %v1376_v48, %v1393_v54 }
  0x9d   : > { %1108 = vmatprep.subr.mxu0 %v1051_v9  ;;  %v614_v21 = vadd.f32 %v550_v43, %v395_v15  ;;  %v985_v7 = vsel %vm910_vm5, %v1461_v37, 0.0  ;;  %vm474_vm7 = vcmp.eq.s32.totalorder %v1376_v48, %v1412_v59  ;;  %v1050_v11 = vadd.f32 %v986_v61, %v834_v13 }
  0x9e   : > { %v394_v34 = vsel %vm319_vm6, %v1402_v58, 0.0  ;;  %v549_v23 = vsel %vm474_vm7, %v1432_v10, 0.0  ;;  %vm693_vm8 = vcmp.eq.s32.totalorder %v1376_v48, %v1442_v14  ;;  %vm909_vm9 = vcmp.eq.s32.totalorder %v1376_v48, %v1465_v39 }
  0x9f   : > { %v833_v29 = vadd.f32 %v769_v20, %v614_v21  ;;  %v613_v30 = vadd.f32 %v549_v23, %v394_v34  ;;  %v768_v5 = vsel %vm693_vm8, %v1454_v24, 0.0  ;;  %1109 = vmatpush2.msra.mxu0 %v1050_v11  ;;  %v984_v31 = vsel %vm909_vm9, %v1468_v42, 0.0 }
  0xa0   : > { %vm318_vm10 = vcmp.eq.s32.totalorder %v1379_v49, %v1382_v51  ;;  %vm473_vm11 = vcmp.eq.s32.totalorder %v1379_v49, %v1390_v53  ;;  %vm692_vm12 = vcmp.eq.s32.totalorder %v1379_v49, %v1419_v62  ;;  %vm908_vm13 = vcmp.eq.s32.totalorder %v1379_v49, %v1422_v63 }
  0xa1   : > { %v1049_v18 = vadd.f32 %v985_v7, %v833_v29  ;;  %v832_v32 = vadd.f32 %v768_v5, %v613_v30  ;;  %v393_v38 = vsel %vm318_vm10, %v1396_v55, 0.0  ;;  %v548_v25 = vsel %vm473_vm11, %v1425_v0, 0.0 }
  0xa2   : > { %v612_v40 = vadd.f32 %v548_v25, %v393_v38  ;;  %v767_v48 = vsel %vm692_vm12, %v1449_v22, 0.0  ;;  %vm317_vm14 = vcmp.eq.s32.totalorder %v1379_v49, %v1393_v54  ;;  %v983_v35 = vsel %vm908_vm13, %v1461_v37, 0.0 }
  0xa3   : > { %1110 = vmatprep.subr.mxu0 %v1049_v18  ;;  %v1048_v41 = vadd.f32 %v984_v31, %v832_v32  ;;  %v392_v33 = vsel %vm317_vm14, %v1402_v58, 0.0  ;;  %vm472_vm15 = vcmp.eq.s32.totalorder %v1379_v49, %v1412_v59  ;;  %vm691_vm0 = vcmp.eq.s32.totalorder %v1379_v49, %v1442_v14 }
  0xa4   : > { %v831_v3 = vadd.f32 %v767_v48, %v612_v40  ;;  %v547_v27 = vsel %vm472_vm15, %v1432_v10, 0.0  ;;  %vm907_vm1 = vcmp.eq.s32.totalorder %v1379_v49, %v1465_v39  ;;  %v766_v44 = vsel %vm691_vm0, %v1454_v24, 0.0 }
  0xa5   : > { %1111 = vmatpush2.msra.mxu0 %v1048_v41  ;;  %v611_v16 = vadd.f32 %v547_v27, %v392_v33  ;;  %v982_v4 = vsel %vm907_vm1, %v1468_v42, 0.0  ;;  %v241_v45 = vadd.s32 184, %v1287_v1  ;;  %v240_v19 = vadd.s32 176, %v1287_v1 }
  0xa6   : > { %v1047_v46 = vadd.f32 %v983_v35, %v831_v3  ;;  %v2032_v12 = vadd.s32 168, %v1287_v1  ;;  %v2035_v6 = vadd.s32 160, %v1287_v1 }
  0xa7   : > { %v830_v47 = vadd.f32 %v766_v44, %v611_v16  ;;  %vm316_vm2 = vcmp.eq.s32.totalorder %v241_v45, %v1382_v51  ;;  %vm471_vm3 = vcmp.eq.s32.totalorder %v241_v45, %v1390_v53  ;;  %vm690_vm4 = vcmp.eq.s32.totalorder %v241_v45, %v1419_v62 }
  0xa8   : > { %1112 = vmatprep.subr.mxu0 %v1047_v46  ;;  %v391_v49 = vsel %vm316_vm2, %v1396_v55, 0.0  ;;  %v546_v8 = vsel %vm471_vm3, %v1425_v0, 0.0  ;;  %v765_v50 = vsel %vm690_vm4, %v1449_v22, 0.0  ;;  %vm906_vm5 = vcmp.eq.s32.totalorder %v241_v45, %v1422_v63 }
  0xa9   : > { %v1046_v28 = vadd.f32 %v982_v4, %v830_v47  ;;  %v610_v36 = vadd.f32 %v546_v8, %v391_v49  ;;  %v981_v26 = vsel %vm906_vm5, %v1461_v37, 0.0  ;;  %vm315_vm6 = vcmp.eq.s32.totalorder %v241_v45, %v1393_v54 }
  0xaa   : > { %v390_v2 = vsel %vm315_vm6, %v1402_v58, 0.0  ;;  %vm470_vm7 = vcmp.eq.s32.totalorder %v241_v45, %v1412_v59  ;;  %vm689_vm8 = vcmp.eq.s32.totalorder %v241_v45, %v1442_v14  ;;  %vm905_vm9 = vcmp.eq.s32.totalorder %v241_v45, %v1465_v39 }
  0xab   : > { %1113 = vmatpush2.msra.mxu0 %v1046_v28  ;;  %v829_v52 = vadd.f32 %v765_v50, %v610_v36  ;;  %v545_v17 = vsel %vm470_vm7, %v1432_v10, 0.0  ;;  %v764_v56 = vsel %vm689_vm8, %v1454_v24, 0.0  ;;  %v980_v57 = vsel %vm905_vm9, %v1468_v42, 0.0 }
  0xac   : > { %v609_v60 = vadd.f32 %v545_v17, %v390_v2  ;;  %vm314_vm10 = vcmp.eq.s32.totalorder %v240_v19, %v1382_v51  ;;  %vm469_vm11 = vcmp.eq.s32.totalorder %v240_v19, %v1390_v53  ;;  %vm688_vm12 = vcmp.eq.s32.totalorder %v240_v19, %v1419_v62 }
  0xad   : > { %v1045_v61 = vadd.f32 %v981_v26, %v829_v52  ;;  %v389_v9 = vsel %vm314_vm10, %v1396_v55, 0.0  ;;  %v544_v15 = vsel %vm469_vm11, %v1425_v0, 0.0  ;;  %v763_v13 = vsel %vm688_vm12, %v1449_v22, 0.0 }
  0xae   : > { %v828_v43 = vadd.f32 %v764_v56, %v609_v60  ;;  %v608_v20 = vadd.f32 %v544_v15, %v389_v9  ;;  %vm904_vm13 = vcmp.eq.s32.totalorder %v240_v19, %v1422_v63  ;;  %vm313_vm14 = vcmp.eq.s32.totalorder %v240_v19, %v1393_v54 }
  0xaf   : > { %1114 = vmatprep.subr.mxu0 %v1045_v61  ;;  %v979_v21 = vsel %vm904_vm13, %v1461_v37, 0.0  ;;  %v388_v7 = vsel %vm313_vm14, %v1402_v58, 0.0  ;;  %vm468_vm15 = vcmp.eq.s32.totalorder %v240_v19, %v1412_v59  ;;  %vm687_vm0 = vcmp.eq.s32.totalorder %v240_v19, %v1442_v14 }
  0xb0   : > { %v1044_v11 = vadd.f32 %v980_v57, %v828_v43  ;;  %v827_v34 = vadd.f32 %v763_v13, %v608_v20  ;;  %v543_v23 = vsel %vm468_vm15, %v1432_v10, 0.0  ;;  %v762_v29 = vsel %vm687_vm0, %v1454_v24, 0.0  ;;  %v2136_v20 = vld [vmem:[%s191_s24] sm:$0x77] }
  0xb1   : > { %v607_v30 = vadd.f32 %v543_v23, %v388_v7  ;;  %vm903_vm1 = vcmp.eq.s32.totalorder %v240_v19, %v1465_v39  ;;  %vm312_vm2 = vcmp.eq.s32.totalorder %v2032_v12, %v1382_v51  ;;  %vm467_vm3 = vcmp.eq.s32.totalorder %v2032_v12, %v1390_v53 }
  0xb2   : > { %1115 = vmatpush2.msra.mxu0 %v1044_v11  ;;  %v1043_v5 = vadd.f32 %v979_v21, %v827_v34  ;;  %v978_v31 = vsel %vm903_vm1, %v1468_v42, 0.0  ;;  %v387_v18 = vsel %vm312_vm2, %v1396_v55, 0.0  ;;  %v542_v32 = vsel %vm467_vm3, %v1425_v0, 0.0 }
  0xb3   : > { %v826_v38 = vadd.f32 %v762_v29, %v607_v30  ;;  %v606_v25 = vadd.f32 %v542_v32, %v387_v18  ;;  %vm686_vm4 = vcmp.eq.s32.totalorder %v2032_v12, %v1419_v62  ;;  %vm902_vm5 = vcmp.eq.s32.totalorder %v2032_v12, %v1422_v63 }
  0xb4   : > { %1116 = vmatprep.subr.mxu0 %v1043_v5  ;;  %v761_v40 = vsel %vm686_vm4, %v1449_v22, 0.0  ;;  %v977_v48 = vsel %vm902_vm5, %v1461_v37, 0.0  ;;  %vm311_vm6 = vcmp.eq.s32.totalorder %v2032_v12, %v1393_v54  ;;  %vm466_vm7 = vcmp.eq.s32.totalorder %v2032_v12, %v1412_v59 }
  0xb5   : > { %v1042_v41 = vadd.f32 %v978_v31, %v826_v38  ;;  %v825_v35 = vadd.f32 %v761_v40, %v606_v25  ;;  %v386_v33 = vsel %vm311_vm6, %v1402_v58, 0.0  ;;  %v541_v3 = vsel %vm466_vm7, %v1432_v10, 0.0 }
  0xb6   : > { %v605_v27 = vadd.f32 %v541_v3, %v386_v33  ;;  %vm685_vm8 = vcmp.eq.s32.totalorder %v2032_v12, %v1442_v14  ;;  %vm901_vm9 = vcmp.eq.s32.totalorder %v2032_v12, %v1465_v39  ;;  %vm310_vm10 = vcmp.eq.s32.totalorder %v2035_v6, %v1382_v51 }
  0xb7   : > { %1117 = vmatpush2.msra.mxu0 %v1042_v41  ;;  %v1041_v16 = vadd.f32 %v977_v48, %v825_v35  ;;  %v760_v44 = vsel %vm685_vm8, %v1454_v24, 0.0  ;;  %v976_v4 = vsel %vm901_vm9, %v1468_v42, 0.0  ;;  %v385_v45 = vsel %vm310_vm10, %v1396_v55, 0.0 }
  0xb8   : > { %v824_v46 = vadd.f32 %v760_v44, %v605_v27  ;;  %vm465_vm11 = vcmp.eq.s32.totalorder %v2035_v6, %v1390_v53  ;;  %vm684_vm12 = vcmp.eq.s32.totalorder %v2035_v6, %v1419_v62  ;;  %vm900_vm13 = vcmp.eq.s32.totalorder %v2035_v6, %v1422_v63 }
  0xb9   : > { %1118 = vmatprep.subr.mxu0 %v1041_v16  ;;  %v540_v19 = vsel %vm465_vm11, %v1425_v0, 0.0  ;;  %v759_v12 = vsel %vm684_vm12, %v1449_v22, 0.0  ;;  %v975_v47 = vsel %vm900_vm13, %v1461_v37, 0.0  ;;  %vm309_vm14 = vcmp.eq.s32.totalorder %v2035_v6, %v1393_v54 }
  0xba   : > { %v1040_v49 = vadd.f32 %v976_v4, %v824_v46  ;;  %v604_v8 = vadd.f32 %v540_v19, %v385_v45  ;;  %v384_v50 = vsel %vm309_vm14, %v1402_v58, 0.0  ;;  %vm464_vm15 = vcmp.eq.s32.totalorder %v2035_v6, %v1412_v59 }
  0xbb   : > { %v539_v28 = vsel %vm464_vm15, %v1432_v10, 0.0  ;;  %vm683_vm0 = vcmp.eq.s32.totalorder %v2035_v6, %v1442_v14  ;;  %vm899_vm1 = vcmp.eq.s32.totalorder %v2035_v6, %v1465_v39  ;;  %v237_v36 = vadd.s32 152, %v1287_v1 }
  0xbc   : > { %1119 = vmatpush2.msra.mxu0 %v1040_v49  ;;  %v823_v26 = vadd.f32 %v759_v12, %v604_v8  ;;  %v603_v2 = vadd.f32 %v539_v28, %v384_v50  ;;  %v758_v52 = vsel %vm683_vm0, %v1454_v24, 0.0  ;;  %v974_v17 = vsel %vm899_vm1, %v1468_v42, 0.0 }
  0xbd   : > { %vm308_vm2 = vcmp.eq.s32.totalorder %v237_v36, %v1382_v51  ;;  %vm463_vm3 = vcmp.eq.s32.totalorder %v237_v36, %v1390_v53  ;;  %vm682_vm4 = vcmp.eq.s32.totalorder %v237_v36, %v1419_v62  ;;  %vm898_vm5 = vcmp.eq.s32.totalorder %v237_v36, %v1422_v63 }
  0xbe   : > { %v1039_v6 = vadd.f32 %v975_v47, %v823_v26  ;;  %v822_v56 = vadd.f32 %v758_v52, %v603_v2  ;;  %v383_v57 = vsel %vm308_vm2, %v1396_v55, 0.0  ;;  %v538_v60 = vsel %vm463_vm3, %v1425_v0, 0.0 }
  0xbf   : > { %v602_v61 = vadd.f32 %v538_v60, %v383_v57  ;;  %v757_v9 = vsel %vm682_vm4, %v1449_v22, 0.0  ;;  %v973_v15 = vsel %vm898_vm5, %v1461_v37, 0.0  ;;  %vm307_vm6 = vcmp.eq.s32.totalorder %v237_v36, %v1393_v54 }
  0xc0   : > { %1120 = vmatprep.subr.mxu0 %v1039_v6  ;;  %v1038_v13 = vadd.f32 %v974_v17, %v822_v56  ;;  %v382_v43 = vsel %vm307_vm6, %v1402_v58, 0.0  ;;  %vm462_vm7 = vcmp.eq.s32.totalorder %v237_v36, %v1412_v59  ;;  %vm681_vm8 = vcmp.eq.s32.totalorder %v237_v36, %v1442_v14 }
  0xc1   : > { %v821_v21 = vadd.f32 %v757_v9, %v602_v61  ;;  %v537_v7 = vsel %vm462_vm7, %v1432_v10, 0.0  ;;  %v756_v11 = vsel %vm681_vm8, %v1454_v24, 0.0  ;;  %vm897_vm9 = vcmp.eq.s32.totalorder %v237_v36, %v1465_v39 }
  0xc2   : > { %1121 = vmatpush2.msra.mxu0 %v1038_v13  ;;  %v601_v34 = vadd.f32 %v537_v7, %v382_v43  ;;  %v972_v23 = vsel %vm897_vm9, %v1468_v42, 0.0  ;;  %v236_v29 = vadd.s32 144, %v1287_v1  ;;  %v235_v5 = vadd.s32 136, %v1287_v1 }
  0xc3   : > { %v1037_v30 = vadd.f32 %v973_v15, %v821_v21  ;;  %v2145_v31 = vadd.s32 128, %v1287_v1  ;;  %v1064_v18 = vcombine.high %v2136_v20, %v2136_v20 }
  0xc4   : > { %v820_v32 = vadd.f32 %v756_v11, %v601_v34  ;;  %vm306_vm10 = vcmp.eq.s32.totalorder %v236_v29, %v1382_v51  ;;  %vm461_vm11 = vcmp.eq.s32.totalorder %v236_v29, %v1390_v53  ;;  %vm680_vm12 = vcmp.eq.s32.totalorder %v236_v29, %v1419_v62 }
  0xc5   : > { %1122 = vmatprep.subr.mxu0 %v1037_v30  ;;  %v381_v38 = vsel %vm306_vm10, %v1396_v55, 0.0  ;;  %v536_v25 = vsel %vm461_vm11, %v1425_v0, 0.0  ;;  %v755_v40 = vsel %vm680_vm12, %v1449_v22, 0.0  ;;  %vm896_vm13 = vcmp.eq.s32.totalorder %v236_v29, %v1422_v63  ;;  %1130 = vmatprep.mubr.f32.mxu0 %v1064_v18 }
  0xc6   : > { %v1036_v1 = vadd.f32 %v972_v23, %v820_v32  ;;  %v600_v48 = vadd.f32 %v536_v25, %v381_v38  ;;  %v971_v41 = vsel %vm896_vm13, %v1461_v37, 0.0  ;;  %vm305_vm14 = vcmp.eq.s32.totalorder %v236_v29, %v1393_v54 }
  0xc7   : > { %v380_v35 = vsel %vm305_vm14, %v1402_v58, 0.0  ;;  %vm460_vm15 = vcmp.eq.s32.totalorder %v236_v29, %v1412_v59  ;;  %vm679_vm0 = vcmp.eq.s32.totalorder %v236_v29, %v1442_v14  ;;  %vm895_vm1 = vcmp.eq.s32.totalorder %v236_v29, %v1465_v39 }
  0xc8   : > { %1123 = vmatpush2.msra.mxu0 %v1036_v1  ;;  %v819_v33 = vadd.f32 %v755_v40, %v600_v48  ;;  %v535_v3 = vsel %vm460_vm15, %v1432_v10, 0.0  ;;  %v754_v27 = vsel %vm679_vm0, %v1454_v24, 0.0  ;;  %v970_v16 = vsel %vm895_vm1, %v1468_v42, 0.0 }
  0xc9   : > { %v599_v44 = vadd.f32 %v535_v3, %v380_v35  ;;  %vm304_vm2 = vcmp.eq.s32.totalorder %v235_v5, %v1382_v51  ;;  %vm459_vm3 = vcmp.eq.s32.totalorder %v235_v5, %v1390_v53  ;;  %vm678_vm4 = vcmp.eq.s32.totalorder %v235_v5, %v1419_v62 }
  0xca   : > { %v1035_v4 = vadd.f32 %v971_v41, %v819_v33  ;;  %v379_v45 = vsel %vm304_vm2, %v1396_v55, 0.0  ;;  %v534_v46 = vsel %vm459_vm3, %v1425_v0, 0.0  ;;  %v753_v19 = vsel %vm678_vm4, %v1449_v22, 0.0 }
  0xcb   : > { %v818_v12 = vadd.f32 %v754_v27, %v599_v44  ;;  %v598_v47 = vadd.f32 %v534_v46, %v379_v45  ;;  %vm894_vm5 = vcmp.eq.s32.totalorder %v235_v5, %v1422_v63  ;;  %vm303_vm6 = vcmp.eq.s32.totalorder %v235_v5, %v1393_v54 }
  0xcc   : > { %1124 = vmatprep.subr.mxu0 %v1035_v4  ;;  %v969_v49 = vsel %vm894_vm5, %v1461_v37, 0.0  ;;  %v378_v8 = vsel %vm303_vm6, %v1402_v58, 0.0  ;;  %vm458_vm7 = vcmp.eq.s32.totalorder %v235_v5, %v1412_v59  ;;  %vm677_vm8 = vcmp.eq.s32.totalorder %v235_v5, %v1442_v14 }
  0xcd   : > { %v1034_v50 = vadd.f32 %v970_v16, %v818_v12  ;;  %v817_v28 = vadd.f32 %v753_v19, %v598_v47  ;;  %v533_v36 = vsel %vm458_vm7, %v1432_v10, 0.0  ;;  %v752_v26 = vsel %vm677_vm8, %v1454_v24, 0.0 }
  0xce   : > { %v597_v2 = vadd.f32 %v533_v36, %v378_v8  ;;  %vm893_vm9 = vcmp.eq.s32.totalorder %v235_v5, %v1465_v39  ;;  %vm302_vm10 = vcmp.eq.s32.totalorder %v2145_v31, %v1382_v51  ;;  %vm457_vm11 = vcmp.eq.s32.totalorder %v2145_v31, %v1390_v53 }
  0xcf   : > { %1125 = vmatpush2.msra.mxu0 %v1034_v50  ;;  %v1033_v52 = vadd.f32 %v969_v49, %v817_v28  ;;  %v968_v17 = vsel %vm893_vm9, %v1468_v42, 0.0  ;;  %v377_v6 = vsel %vm302_vm10, %v1396_v55, 0.0  ;;  %v532_v56 = vsel %vm457_vm11, %v1425_v0, 0.0 }
  0xd0   : > { %v816_v57 = vadd.f32 %v752_v26, %v597_v2  ;;  %v596_v60 = vadd.f32 %v532_v56, %v377_v6  ;;  %vm676_vm12 = vcmp.eq.s32.totalorder %v2145_v31, %v1419_v62  ;;  %vm892_vm13 = vcmp.eq.s32.totalorder %v2145_v31, %v1422_v63 }
  0xd1   : > { %1126 = vmatprep.subr.mxu0 %v1033_v52  ;;  %v751_v51 = vsel %vm676_vm12, %v1449_v22, 0.0  ;;  %v967_v53 = vsel %vm892_vm13, %v1461_v37, 0.0  ;;  %vm301_vm14 = vcmp.eq.s32.totalorder %v2145_v31, %v1393_v54  ;;  %vm456_vm15 = vcmp.eq.s32.totalorder %v2145_v31, %v1412_v59 }
  0xd2   : > { %v1032_v55 = vadd.f32 %v968_v17, %v816_v57  ;;  %v815_v0 = vadd.f32 %v751_v51, %v596_v60  ;;  %v376_v61 = vsel %vm301_vm14, %v1402_v58, 0.0  ;;  %v531_v62 = vsel %vm456_vm15, %v1432_v10, 0.0 }
  0xd3   : > { %v595_v9 = vadd.f32 %v531_v62, %v376_v61  ;;  %vm675_vm0 = vcmp.eq.s32.totalorder %v2145_v31, %v1442_v14  ;;  %vm891_vm1 = vcmp.eq.s32.totalorder %v2145_v31, %v1465_v39 }
  0xd4   : > { %1127 = vmatpush2.msra.mxu0 %v1032_v55  ;;  %v1031_v63 = vadd.f32 %v967_v53, %v815_v0  ;;  %v750_v54 = vsel %vm675_vm0, %v1454_v24, 0.0  ;;  %v966_v59 = vsel %vm891_vm1, %v1468_v42, 0.0 }
  0xd5   : > { %v814_v22 = vadd.f32 %v750_v54, %v595_v9 }
  0xd6   : > { %1128 = vmatprep.subr.mxu0 %v1031_v63 }
  0xd7   : > { %v1030_v37 = vadd.f32 %v966_v59, %v814_v22 }
  0xd9   : > { %1129 = vmatpush2.msra.mxu0 %v1030_v37 }
  0xda   : > { %1131 = vmatmul.mubr.f32.vlgmr.msra.gmra.mxu0 %v2136_v20 }
 0x19a   : > { %v1132_v58 = vpop.f32.mrf.mxu0 }
 0x19c   : > { %v1134_v10 = vpop.f32.mrf.mxu0 }
 0x19d   : > { %v1139_v14 = vcombine.low %v1132_v58, %v1134_v10 }
 0x19f   : > { %1141 = vst [vmem:[%s204_s27] sm:$0x77] %v1139_v14 }
 0x1a0 PF: > { %s13_s12 = sadd.s32 1, %s1255_s12  }
 0x1a1   : > { %p10_p4 = scmp.ge.s32.totalorder %s13_s12, 4  }
 0x1a3   :  { %12 = sbr.rel (!%p10_p4) target bundleno = 1 (0x1), region = 68 }

</bundles_post_ra>
